<compile_context>
chip_gen: v7x
topology: tpu7x:2x2x1
jax: 0.10.0
libtpu: 0.0.40
codegen_flags: <defaults>
</compile_context>

<pallas_src>
import jax
import jax.numpy as jnp
from jax.experimental import pallas as pl
from jax.experimental.pallas import tpu as pltpu


def _attention_decoder_kernel(len_ref, h_ref, w1_ref, w2_ref,
                              wd1_ref, bd1_ref, wd2_ref, bd2_ref,
                              ctx_ref, logit_ref):
    bt, L, H = h_ref.shape
    A = w1_ref.shape[1]

    h = h_ref[...]                                    # (bt, L, H), compute dtype
    h2 = h.reshape(bt * L, H)                         # merge leading dims (cheap)

    # --- attention logits: w2 . tanh(W1 h) -----------------------------------
    # One MXU matmul with bt*L rows; the N=1 second projection is a VPU
    # multiply + lane reduce so scores come out lane-dense as (bt, L).
    proj = jnp.tanh(jnp.dot(h2, w1_ref[...],
                            preferred_element_type=jnp.float32))      # (bt*L, A) f32
    att = jnp.sum((proj * w2_ref[...]).reshape(bt, L, A), axis=-1)     # (bt, L)

    # --- length mask + softmax over L (lane axis) ----------------------------
    pos = jax.lax.broadcasted_iota(jnp.int32, (bt, L), 1)
    valid = pos < len_ref[...]                        # (bt, 1) broadcast -> (bt, L)
    att = jnp.where(valid, att, -1e30)                # finite: no NaN if a row is empty
    m = jnp.max(att, axis=-1, keepdims=True)          # (bt, 1)
    e = jnp.exp(att - m)                              # unnormalized weights (bt, L)
    denom = jnp.sum(e, axis=-1, keepdims=True)        # (bt, 1)
    inv = pl.reciprocal(denom, approx=True)           # EUP slot
    inv = inv * (2.0 - denom * inv)                   # one Newton step -> ~f32 exact

    # --- weighted sum on the MXU ---------------------------------------------
    # Pack the per-batch score rows into one block-diagonal (bt, bt*L) matrix so
    # the whole batch tile is a single (bt, bt*L) @ (bt*L, H) matmul.
    col = jax.lax.broadcasted_iota(jnp.int32, (bt, bt * L), 1)
    row = jax.lax.broadcasted_iota(jnp.int32, (bt, bt * L), 0)
    block_mask = (col >= row * L) & (col < (row + 1) * L)
    scores_diag = jnp.where(block_mask, jnp.tile(e, (1, bt)), 0.0)     # (bt, bt*L)
    ctx = jnp.dot(scores_diag.astype(h2.dtype), h2,
                  preferred_element_type=jnp.float32)                  # (bt, H) f32
    ctx = ctx * inv                                   # normalize (bt, H) once, not (bt, L)
    ctx_ref[...] = ctx.astype(ctx_ref.dtype)

    # --- decoder head: Linear(H, 150) -> ReLU -> Linear(150, 1) --------------
    dec = jnp.dot(ctx, wd1_ref[...], preferred_element_type=jnp.float32)
    dec = jnp.maximum(dec + bd1_ref[...], 0.0)        # (bt, D)
    logit = jnp.sum(dec * wd2_ref[...], axis=-1, keepdims=True) + bd2_ref[...]
    logit_ref[...] = logit.astype(logit_ref.dtype)


def rnn_attention_decoder_forward(hidden_states, lengths, w1, w2,
                                  wd1, bd1, wd2, bd2,
                                  *, block_b=None, compute_dtype=None):
    """Fused attention + decoder forward of RNNBase.

    hidden_states: (B, L, H) padded RNN outputs (batch-first).
    lengths:       (B,) int valid sequence lengths.
    w1:  (H, A) = Attention.W1.weight.T   (A = H // 2)
    w2:  (A,)   = Attention.w2.weight[0]
    wd1: (H, D) = decoder[0].weight.T     (D = 150)
    bd1: (D,)   = decoder[0].bias
    wd2: (D,)   = decoder[2].weight[0]
    bd2: ()     = decoder[2].bias[0]
    Returns (context (B, H) float32, logits (B, 1) float32).
    """
    B, L, H = hidden_states.shape
    A = w1.shape[1]
    D = wd1.shape[1]

    if compute_dtype is not None:                     # bf16 recommended on v6e/v7x
        hidden_states = hidden_states.astype(compute_dtype)
        w1 = w1.astype(compute_dtype)

    # Batch tile: multiple of 8 sublanes, sized so block_b * L >= ~256 MXU rows.
    if block_b is None:
        if B <= 8:
            block_b = B
        else:
            block_b = max(8, min((B // 8) * 8, 8 * pl.cdiv(pl.cdiv(256, L), 8)))
    grid_b = pl.cdiv(B, block_b)
    B_pad = grid_b * block_b

    lengths2d = lengths.reshape(B, 1).astype(jnp.int32)
    if B_pad != B:                                    # keep padded rows well-defined
        hidden_states = jnp.pad(hidden_states, ((0, B_pad - B), (0, 0), (0, 0)))
        lengths2d = jnp.pad(lengths2d, ((0, B_pad - B), (0, 0)))

    w1 = w1.reshape(H, A)
    w2_row = w2.reshape(1, A).astype(jnp.float32)
    wd1 = wd1.reshape(H, D).astype(jnp.float32)
    bd1_row = bd1.reshape(1, D).astype(jnp.float32)
    wd2_row = wd2.reshape(1, D).astype(jnp.float32)
    bd2_11 = jnp.asarray(bd2, jnp.float32).reshape(1, 1)

    # Explicit VMEM budget (double-buffered blocks + weights) with headroom;
    # matters on v7x (64 MiB physical, 32 MiB scoped default).
    elt = jnp.dtype(hidden_states.dtype).itemsize
    per_step = (2 * block_b * L * H * elt                  # hidden block x2 buffers
                + 2 * block_b * (H + 1) * 4                # outputs x2 buffers
                + 2 * block_b * 4                          # lengths block
                + (H * A) * elt + (A + H * D + 2 * D + 1) * 4)
    vmem_limit = int(min(max(4 * per_step, 16 * 1024 * 1024), 48 * 1024 * 1024))

    grid_spec = pltpu.PrefetchScalarGridSpec(
        num_scalar_prefetch=0,
        grid=(grid_b,),
        in_specs=[
            pl.BlockSpec((block_b, 1), lambda i: (i, 0)),        # lengths
            pl.BlockSpec((block_b, L, H), lambda i: (i, 0, 0)),  # hidden states
            pl.BlockSpec((H, A), lambda i: (0, 0)),              # attention W1
            pl.BlockSpec((1, A), lambda i: (0, 0)),              # attention w2 (row)
            pl.BlockSpec((H, D), lambda i: (0, 0)),              # decoder W1
            pl.BlockSpec((1, D), lambda i: (0, 0)),              # decoder b1
            pl.BlockSpec((1, D), lambda i: (0, 0)),              # decoder w2 (row)
            pl.BlockSpec((1, 1), lambda i: (0, 0)),              # decoder b2
        ],
        out_specs=[
            pl.BlockSpec((block_b, H), lambda i: (i, 0)),        # context
            pl.BlockSpec((block_b, 1), lambda i: (i, 0)),        # logits
        ],
    )

    ctx, logits = pl.pallas_call(
        _attention_decoder_kernel,
        out_shape=(jax.ShapeDtypeStruct((B_pad, H), jnp.float32),
                   jax.ShapeDtypeStruct((B_pad, 1), jnp.float32)),
        grid_spec=grid_spec,
        compiler_params=pltpu.CompilerParams(
            dimension_semantics=("parallel",),    # sharded across both TCs on v7x
            vmem_limit_bytes=vmem_limit),
    )(lengths2d, hidden_states, w1, w2_row, wd1, bd1_row, wd2_row, bd2_11)

    if B_pad != B:
        ctx, logits = ctx[:B], logits[:B]
    return ctx, logits


def reference_forward(hidden_states, lengths, w1, w2, wd1, bd1, wd2, bd2):
    """Pure-JAX reference mirroring RNNBase's attention branch."""
    B, L, H = hidden_states.shape
    A, D = w1.shape[1], wd1.shape[1]
    att = (jnp.tanh(hidden_states @ w1) @ w2.reshape(A, 1))[..., 0]    # (B, L)
    mask = jnp.arange(L)[None, :] < lengths[:, None]
    att = jnp.where(mask, att, -jnp.inf)
    scores = jax.nn.softmax(att, axis=1)
    ctx = jnp.sum(scores[..., None] * hidden_states, axis=1)           # (B, H)
    dec = jnp.maximum(ctx @ wd1 + bd1.reshape(1, D), 0.0)
    logits = dec @ wd2.reshape(D, 1) + jnp.asarray(bd2).reshape(1, 1)
    return ctx, logits


if __name__ == "__main__":
    B, L, H = 64, 8, 32          # batch, seq_len, rnn_hidden_size
    A = H // 2                   # Attention.attention_dim
    D = 150                      # decoder hidden width (as in RNNBase)

    key = jax.random.PRNGKey(0)
    k_h, k_len, k_w1, k_w2, k_wd1, k_bd1, k_wd2, k_bd2 = jax.random.split(key, 8)

    hidden_states = jax.random.normal(k_h, (B, L, H), dtype=jnp.float32)
    lengths = jax.random.randint(k_len, (B,), 1, L + 1, dtype=jnp.int32)

    def uinit(k, shape, fan_in):
        bound = 1.0 / jnp.sqrt(jnp.float32(fan_in))
        return jax.random.uniform(k, shape, minval=-bound, maxval=bound,
                                  dtype=jnp.float32)

    w1 = uinit(k_w1, (H, A), H)       # Attention.W1 (stored transposed)
    w2 = uinit(k_w2, (A,), A)         # Attention.w2
    wd1 = uinit(k_wd1, (H, D), H)     # decoder Linear(H, 150) weight^T
    bd1 = uinit(k_bd1, (D,), H)
    wd2 = uinit(k_wd2, (D,), D)       # decoder Linear(150, 1) weight
    bd2 = uinit(k_bd2, (), D)

    # float32 path (tight check)
    ctx, logits = rnn_attention_decoder_forward(
        hidden_states, lengths, w1, w2, wd1, bd1, wd2, bd2)
    ctx = jax.block_until_ready(ctx)
    logits = jax.block_until_ready(logits)

    ctx_ref, log_ref = reference_forward(
        hidden_states, lengths, w1, w2, wd1, bd1, wd2, bd2)
    assert ctx.shape == (B, H) and logits.shape == (B, 1)
    assert jnp.allclose(ctx, ctx_ref, atol=1e-4, rtol=1e-4), (
        f"ctx max err = {float(jnp.max(jnp.abs(ctx - ctx_ref)))}")
    assert jnp.allclose(logits, log_ref, atol=1e-4, rtol=1e-4), (
        f"logit max err = {float(jnp.max(jnp.abs(logits - log_ref)))}")

    # bf16 compute path (recommended on v6e/v7x for MXU / DMA throughput)
    ctx_bf, log_bf = rnn_attention_decoder_forward(
        hidden_states, lengths, w1, w2, wd1, bd1, wd2, bd2,
        compute_dtype=jnp.bfloat16)
    ctx_bf = jax.block_until_ready(ctx_bf)
    log_bf = jax.block_until_ready(log_bf)
    hs_q = hidden_states.astype(jnp.bfloat16).astype(jnp.float32)
    w1_q = w1.astype(jnp.bfloat16).astype(jnp.float32)
    ctx_ref_q, log_ref_q = reference_forward(
        hs_q, lengths, w1_q, w2, wd1, bd1, wd2, bd2)
    assert jnp.allclose(ctx_bf, ctx_ref_q, atol=5e-2, rtol=5e-2), (
        f"bf16 ctx max err = {float(jnp.max(jnp.abs(ctx_bf - ctx_ref_q)))}")
    assert jnp.allclose(log_bf, log_ref_q, atol=5e-2, rtol=5e-2), (
        f"bf16 logit max err = {float(jnp.max(jnp.abs(log_bf - log_ref_q)))}")

    print("KERNEL_OK")
</pallas_src>

<mosaic_0001>
module attributes {stable_mosaic.version = 11 : i64} {
  func.func @_attention_decoder_kernel(%arg0: i32, %arg1: memref<32x1xi32, #tpu.memory_space<vmem>>, %arg2: memref<32x8x32xf32, #tpu.memory_space<vmem>>, %arg3: memref<32x16xf32, #tpu.memory_space<vmem>>, %arg4: memref<1x16xf32, #tpu.memory_space<vmem>>, %arg5: memref<32x150xf32, #tpu.memory_space<vmem>>, %arg6: memref<1x150xf32, #tpu.memory_space<vmem>>, %arg7: memref<1x150xf32, #tpu.memory_space<vmem>>, %arg8: memref<1x1xf32, #tpu.memory_space<vmem>>, %arg9: memref<32x32xf32, #tpu.memory_space<vmem>>, %arg10: memref<32x1xf32, #tpu.memory_space<vmem>>) attributes {dimension_semantics = [#tpu.dimension_semantics<parallel>], iteration_bounds = array<i64: 2>, scalar_prefetch = 0 : i64, scratch_operands = 0 : i64, tpu.core_type = #tpu.core_type<tc>, window_params = [{transform_indices = @transform_0, window_bounds = array<i64: 32, 1>}, {transform_indices = @transform_1, window_bounds = array<i64: 32, 8, 32>}, {pipeline_mode = #tpu.pipeline_mode<synchronous>, transform_indices = @transform_2, window_bounds = array<i64: 32, 16>}, {pipeline_mode = #tpu.pipeline_mode<synchronous>, transform_indices = @transform_3, window_bounds = array<i64: 1, 16>}, {pipeline_mode = #tpu.pipeline_mode<synchronous>, transform_indices = @transform_4, window_bounds = array<i64: 32, 150>}, {pipeline_mode = #tpu.pipeline_mode<synchronous>, transform_indices = @transform_5, window_bounds = array<i64: 1, 150>}, {pipeline_mode = #tpu.pipeline_mode<synchronous>, transform_indices = @transform_6, window_bounds = array<i64: 1, 150>}, {pipeline_mode = #tpu.pipeline_mode<synchronous>, transform_indices = @transform_7, window_bounds = array<i64: 1, 1>}, {transform_indices = @transform_8, window_bounds = array<i64: 32, 32>}, {transform_indices = @transform_9, window_bounds = array<i64: 32, 1>}]} {
    %c0 = arith.constant 0 : index
    %c0_0 = arith.constant 0 : index
    %c0_1 = arith.constant 0 : index
    %0 = vector.load %arg2[%c0, %c0_0, %c0_1] : memref<32x8x32xf32, #tpu.memory_space<vmem>>, vector<32x8x32xf32>
    %1 = vector.shape_cast %0 : vector<32x8x32xf32> to vector<256x32xf32>
    %c0_2 = arith.constant 0 : index
    %c0_3 = arith.constant 0 : index
    %2 = vector.load %arg3[%c0_2, %c0_3] : memref<32x16xf32, #tpu.memory_space<vmem>>, vector<32x16xf32>
    %cst = arith.constant dense<0.000000e+00> : vector<256x16xf32>
    %3 = tpu.matmul %1, %2, %cst {dimension_numbers = #tpu.dot_dimension_numbers<[1], [0], [0], [1], [0, 0, 1, 1], [], []>} : vector<256x32xf32>, vector<32x16xf32>, vector<256x16xf32> -> vector<256x16xf32>
    %4 = math.tanh %3 : vector<256x16xf32>
    %c0_4 = arith.constant 0 : index
    %c0_5 = arith.constant 0 : index
    %5 = vector.load %arg4[%c0_4, %c0_5] : memref<1x16xf32, #tpu.memory_space<vmem>>, vector<1x16xf32>
    %6 = vector.broadcast %5 : vector<1x16xf32> to vector<256x16xf32>
    %7 = arith.mulf %4, %6 : vector<256x16xf32>
    %8 = vector.shape_cast %7 : vector<256x16xf32> to vector<32x8x16xf32>
    %cst_6 = arith.constant dense<0.000000e+00> : vector<32x8xf32>
    %9 = vector.multi_reduction <add>, %8, %cst_6 [2] : vector<32x8x16xf32> to vector<32x8xf32>
    %10 = tpu.iota {dimensions = array<i32: 1>} : vector<32x8xi32>
    %c0_7 = arith.constant 0 : index
    %c0_8 = arith.constant 0 : index
    %11 = vector.load %arg1[%c0_7, %c0_8] : memref<32x1xi32, #tpu.memory_space<vmem>>, vector<32x1xi32>
    %12 = vector.broadcast %11 : vector<32x1xi32> to vector<32x8xi32>
    %13 = arith.cmpi slt, %10, %12 : vector<32x8xi32>
    %cst_9 = arith.constant -1.000000e+30 : f32
    %14 = vector.broadcast %cst_9 : f32 to vector<32x8xf32>
    %15 = arith.select %13, %9, %14 : vector<32x8xi1>, vector<32x8xf32>
    %cst_10 = arith.constant dense<0xFF800000> : vector<32xf32>
    %16 = vector.multi_reduction <maximumf>, %15, %cst_10 [1] : vector<32x8xf32> to vector<32xf32>
    %17 = vector.shape_cast %16 : vector<32xf32> to vector<32x1xf32>
    %18 = vector.broadcast %17 : vector<32x1xf32> to vector<32x8xf32>
    %19 = arith.subf %15, %18 : vector<32x8xf32>
    %20 = math.exp %19 : vector<32x8xf32>
    %cst_11 = arith.constant dense<0.000000e+00> : vector<32xf32>
    %21 = vector.multi_reduction <add>, %20, %cst_11 [1] : vector<32x8xf32> to vector<32xf32>
    %22 = vector.shape_cast %21 : vector<32xf32> to vector<32x1xf32>
    %23 = tpu.reciprocal %22 {approx = true} : vector<32x1xf32> -> vector<32x1xf32>
    %24 = arith.mulf %22, %23 : vector<32x1xf32>
    %cst_12 = arith.constant 2.000000e+00 : f32
    %25 = vector.broadcast %cst_12 : f32 to vector<32x1xf32>
    %26 = arith.subf %25, %24 : vector<32x1xf32>
    %27 = arith.mulf %23, %26 : vector<32x1xf32>
    %28 = tpu.iota {dimensions = array<i32: 1>} : vector<32x256xi32>
    %29 = tpu.iota {dimensions = array<i32: 0>} : vector<32x256xi32>
    %c8_i32 = arith.constant 8 : i32
    %30 = vector.broadcast %c8_i32 : i32 to vector<32x256xi32>
    %31 = arith.muli %29, %30 : vector<32x256xi32>
    %32 = arith.cmpi sge, %28, %31 : vector<32x256xi32>
    %c1_i32 = arith.constant 1 : i32
    %33 = vector.broadcast %c1_i32 : i32 to vector<32x256xi32>
    %34 = arith.addi %29, %33 : vector<32x256xi32>
    %c8_i32_13 = arith.constant 8 : i32
    %35 = vector.broadcast %c8_i32_13 : i32 to vector<32x256xi32>
    %36 = arith.muli %34, %35 : vector<32x256xi32>
    %37 = arith.cmpi slt, %28, %36 : vector<32x256xi32>
    %38 = arith.andi %32, %37 : vector<32x256xi1>
    %39 = tpu.concatenate %20, %20, %20, %20, %20, %20, %20, %20, %20, %20, %20, %20, %20, %20, %20, %20, %20, %20, %20, %20, %20, %20, %20, %20, %20, %20, %20, %20, %20, %20, %20, %20 in 1 : vector<32x8xf32>, vector<32x8xf32>, vector<32x8xf32>, vector<32x8xf32>, vector<32x8xf32>, vector<32x8xf32>, vector<32x8xf32>, vector<32x8xf32>, vector<32x8xf32>, vector<32x8xf32>, vector<32x8xf32>, vector<32x8xf32>, vector<32x8xf32>, vector<32x8xf32>, vector<32x8xf32>, vector<32x8xf32>, vector<32x8xf32>, vector<32x8xf32>, vector<32x8xf32>, vector<32x8xf32>, vector<32x8xf32>, vector<32x8xf32>, vector<32x8xf32>, vector<32x8xf32>, vector<32x8xf32>, vector<32x8xf32>, vector<32x8xf32>, vector<32x8xf32>, vector<32x8xf32>, vector<32x8xf32>, vector<32x8xf32>, vector<32x8xf32> -> vector<32x256xf32>
    %cst_14 = arith.constant 0.000000e+00 : f32
    %40 = vector.broadcast %cst_14 : f32 to vector<32x256xf32>
    %41 = arith.select %38, %39, %40 : vector<32x256xi1>, vector<32x256xf32>
    %cst_15 = arith.constant dense<0.000000e+00> : vector<32x32xf32>
    %42 = tpu.matmul %41, %1, %cst_15 {dimension_numbers = #tpu.dot_dimension_numbers<[1], [0], [0], [1], [0, 0, 1, 1], [], []>} : vector<32x256xf32>, vector<256x32xf32>, vector<32x32xf32> -> vector<32x32xf32>
    %43 = vector.broadcast %27 : vector<32x1xf32> to vector<32x32xf32>
    %44 = arith.mulf %42, %43 : vector<32x32xf32>
    %c0_16 = arith.constant 0 : index
    %c0_17 = arith.constant 0 : index
    %45 = vector.load %arg9[%c0_16, %c0_17] : memref<32x32xf32, #tpu.memory_space<vmem>>, vector<32x32xf32>
    tpu.vector_store %arg9[%c0_16, %c0_17], %44 {strides = array<i32>} : memref<32x32xf32, #tpu.memory_space<vmem>>, vector<32x32xf32>,
    %c0_18 = arith.constant 0 : index
    %c0_19 = arith.constant 0 : index
    %46 = vector.load %arg5[%c0_18, %c0_19] : memref<32x150xf32, #tpu.memory_space<vmem>>, vector<32x150xf32>
    %cst_20 = arith.constant dense<0.000000e+00> : vector<32x150xf32>
    %47 = tpu.matmul %44, %46, %cst_20 {dimension_numbers = #tpu.dot_dimension_numbers<[1], [0], [0], [1], [0, 0, 1, 1], [], []>} : vector<32x32xf32>, vector<32x150xf32>, vector<32x150xf32> -> vector<32x150xf32>
    %c0_21 = arith.constant 0 : index
    %c0_22 = arith.constant 0 : index
    %48 = vector.load %arg6[%c0_21, %c0_22] : memref<1x150xf32, #tpu.memory_space<vmem>>, vector<1x150xf32>
    %49 = vector.broadcast %48 : vector<1x150xf32> to vector<32x150xf32>
    %50 = arith.addf %47, %49 : vector<32x150xf32>
    %cst_23 = arith.constant 0.000000e+00 : f32
    %51 = vector.broadcast %cst_23 : f32 to vector<32x150xf32>
    %52 = arith.maximumf %50, %51 : vector<32x150xf32>
    %c0_24 = arith.constant 0 : index
    %c0_25 = arith.constant 0 : index
    %53 = vector.load %arg7[%c0_24, %c0_25] : memref<1x150xf32, #tpu.memory_space<vmem>>, vector<1x150xf32>
    %54 = vector.broadcast %53 : vector<1x150xf32> to vector<32x150xf32>
    %55 = arith.mulf %52, %54 : vector<32x150xf32>
    %cst_26 = arith.constant dense<0.000000e+00> : vector<32xf32>
    %56 = vector.multi_reduction <add>, %55, %cst_26 [1] : vector<32x150xf32> to vector<32xf32>
    %57 = vector.shape_cast %56 : vector<32xf32> to vector<32x1xf32>
    %c0_27 = arith.constant 0 : index
    %c0_28 = arith.constant 0 : index
    %58 = vector.load %arg8[%c0_27, %c0_28] : memref<1x1xf32, #tpu.memory_space<vmem>>, vector<1x1xf32>
    %59 = vector.broadcast %58 : vector<1x1xf32> to vector<32x1xf32>
    %60 = arith.addf %57, %59 : vector<32x1xf32>
    %c0_29 = arith.constant 0 : index
    %c0_30 = arith.constant 0 : index
    %61 = vector.load %arg10[%c0_29, %c0_30] : memref<32x1xf32, #tpu.memory_space<vmem>>, vector<32x1xf32>
    tpu.vector_store %arg10[%c0_29, %c0_30], %60 {strides = array<i32>} : memref<32x1xf32, #tpu.memory_space<vmem>>, vector<32x1xf32>,
    return
  }
  func.func @transform_0(%arg0: i32) -> (i32, i32) {
    %c0_i32 = arith.constant 0 : i32
    %c0_i32_0 = arith.constant 0 : i32
    return %arg0, %c0_i32 : i32, i32
  }
  func.func @transform_1(%arg0: i32) -> (i32, i32, i32) {
    %c0_i32 = arith.constant 0 : i32
    %c0_i32_0 = arith.constant 0 : i32
    %c0_i32_1 = arith.constant 0 : i32
    return %arg0, %c0_i32, %c0_i32_0 : i32, i32, i32
  }
  func.func @transform_2(%arg0: i32) -> (i32, i32) {
    %c0_i32 = arith.constant 0 : i32
    %c0_i32_0 = arith.constant 0 : i32
    %c0_i32_1 = arith.constant 0 : i32
    return %c0_i32, %c0_i32_0 : i32, i32
  }
  func.func @transform_3(%arg0: i32) -> (i32, i32) {
    %c0_i32 = arith.constant 0 : i32
    %c0_i32_0 = arith.constant 0 : i32
    %c0_i32_1 = arith.constant 0 : i32
    return %c0_i32, %c0_i32_0 : i32, i32
  }
  func.func @transform_4(%arg0: i32) -> (i32, i32) {
    %c0_i32 = arith.constant 0 : i32
    %c0_i32_0 = arith.constant 0 : i32
    %c0_i32_1 = arith.constant 0 : i32
    return %c0_i32, %c0_i32_0 : i32, i32
  }
  func.func @transform_5(%arg0: i32) -> (i32, i32) {
    %c0_i32 = arith.constant 0 : i32
    %c0_i32_0 = arith.constant 0 : i32
    %c0_i32_1 = arith.constant 0 : i32
    return %c0_i32, %c0_i32_0 : i32, i32
  }
  func.func @transform_6(%arg0: i32) -> (i32, i32) {
    %c0_i32 = arith.constant 0 : i32
    %c0_i32_0 = arith.constant 0 : i32
    %c0_i32_1 = arith.constant 0 : i32
    return %c0_i32, %c0_i32_0 : i32, i32
  }
  func.func @transform_7(%arg0: i32) -> (i32, i32) {
    %c0_i32 = arith.constant 0 : i32
    %c0_i32_0 = arith.constant 0 : i32
    %c0_i32_1 = arith.constant 0 : i32
    return %c0_i32, %c0_i32_0 : i32, i32
  }
  func.func @transform_8(%arg0: i32) -> (i32, i32) {
    %c0_i32 = arith.constant 0 : i32
    %c0_i32_0 = arith.constant 0 : i32
    return %arg0, %c0_i32 : i32, i32
  }
  func.func @transform_9(%arg0: i32) -> (i32, i32) {
    %c0_i32 = arith.constant 0 : i32
    %c0_i32_0 = arith.constant 0 : i32
    return %arg0, %c0_i32 : i32, i32
  }
}

</mosaic_0001>

<bundles_post_ra>
// kernel: tpu_custom_call.1
= control target key start
LH: loop header
LB: loop body
LE: loop exit
PB: predicated region body
PF: predicated region fallthrough
CT: control target
= control target key end

     0   :  { %s2291_s11 = smov 0   ;;  %s3020_s0 = inlined_call_operand.vmem [shape: s32[64,1], index: 0, kind: input, shape index: {}]   ;;  %s3021_s1 = inlined_call_operand.vmem [shape: f32[64,8,32], index: 1, kind: input, shape index: {}]   ;;  %s3022_s2 = inlined_call_operand.vmem [shape: f32[32,16], index: 2, kind: input, shape index: {}]   ;;  %s3023_s3 = inlined_call_operand.vmem [shape: f32[1,16], index: 3, kind: input, shape index: {}]   ;;  %s3024_s4 = inlined_call_operand.vmem [shape: f32[32,150], index: 4, kind: input, shape index: {}]   ;;  %s3025_s5 = inlined_call_operand.vmem [shape: f32[1,150], index: 5, kind: input, shape index: {}]   ;;  %s3026_s6 = inlined_call_operand.vmem [shape: f32[1,150], index: 6, kind: input, shape index: {}]   ;;  %s3027_s7 = inlined_call_operand.<no memory space> [shape: f32[1,1], index: 7, kind: input, shape index: {}]   ;;  %s3028_s8 = inlined_call_operand.vmem [shape: f32[64,32], index: 8, kind: output, shape index: {0}]   ;;  %s3029_s9 = inlined_call_operand.vmem [shape: f32[64,1], index: 9, kind: output, shape index: {1}]  }
   0x1   :  { %v15_v0 = vstv %s3027_s7 }
   0x2   :  { %16 = vst [vmem:[#allocation2] sm:$0x1] %v15_v0 }
   0x3 LB: > { %s1861_s12 = sadd.s32 4294967295, %s2219_s11   ;;  %p1865_p0 = scmp.ge.s32.totalorder %s2219_s11, 1  ;;  %s2219_s11 = sphi %s2291_s11, %s22_s11  }
   0x4   : > { %p304_p1 = scmp.lt.s32.totalorder %s2219_s11, 3 }
   0x6   : > { %p305_p2 = pnand %p1865_p0, %p304_p1 }
   0x7   : > { %v406_v1 = vld [vmem:[%s3022_s2] sm:$0xff] (!%p305_p2)  ;;  %v407_v2 = vld [vmem:[%s3022_s2 + $0x8] sm:$0xff] (!%p305_p2)  ;;  %v408_v3 = vld [vmem:[%s3022_s2 + $0x10] sm:$0xff] (!%p305_p2)  ;;  %s1868_s18 = sshll.u32 (!%p305_p2), %s1861_s12, 5  ;;  %v2221_v6 = vmov (!%p305_p2), 0   ;;  %s1866_s21 = sshll.u32 (!%p305_p2), %s1861_s12, 2 }
   0x8   : > { %308 = sbr.rel (%p305_p2) target bundleno = 1427 (0x593), region = 52  ;;  %v2058_v4 = vpack.c.bf16 (!%p305_p2), %v407_v2, %v406_v1  ;;  %v409_v5 = vld [vmem:[%s3022_s2 + $0x18] sm:$0xff] (!%p305_p2)  ;;  %p357_p3 = scmp.lt.s32.totalorder (!%p305_p2), %s1868_s18, 63  ;;  %2131 = vset.pattern.permute.xlu1 (!%p305_p2), %v2221_v6  ;;  %2132 = vset.pattern.permute.xlu0 (!%p305_p2), %v2221_v6  ;;  %vm410_vm0 = vcmask (!%p305_p2), 261120   ;;  %v2488_v47 = vld [vmem:[%s3023_s3] ss:$0 sm:$0xff] (!%p305_p2) }
   0x9   : > { %v2062_v7 = vpack.c.bf16 (!%p305_p2), %v409_v5, %v408_v3  ;;  %p351_p4 = scmp.lt.s32.totalorder (!%p305_p2), %s1866_s21, 7  ;;  %vm803_vm1 = vcmask (!%p305_p2), 130048   ;;  %vm1082_vm2 = vcmask (!%p305_p2), 1041409   ;;  %vm1084_vm3 = vcmask (!%p305_p2), 1042434   ;;  %s2222_s12 = smov (!%p305_p2), 32  }
   0xa   : > { %2059 = vmatprep.subr.bf16.mxu0 (!%p305_p2), %v2058_v4  ;;  %vm1086_vm4 = vcmask (!%p305_p2), 1043459   ;;  %vm1088_vm5 = vcmask (!%p305_p2), 1044484   ;;  %vm1090_vm6 = vcmask (!%p305_p2), 1045509   ;;  %vm1092_vm7 = vcmask (!%p305_p2), 1046534   ;;  %s2223_s13 = smov (!%p305_p2), 8   ;;  %s2224_s14 = smov (!%p305_p2), 56  }
   0xb   : > { %2061 = vmatpush3.bf16.msra.mxu0 (!%p305_p2), %v2058_v4  ;;  %vm1094_vm8 = vcmask (!%p305_p2), 1047559   ;;  %vm1125_vm9 = vcmask (!%p305_p2), 64512   ;;  %s2225_s7 = smov (!%p305_p2), 16   ;;  %s2226_s15 = smov (!%p305_p2), 64   ;;  %vm1412_vm14 = vcmask (!%p305_p2), 195584   ;;  %vm1421_vm15 = vcmask (!%p305_p2), 326656  }
   0xc   : > { %2063 = vmatprep.subr.bf16.mxu0 (!%p305_p2), %v2062_v7  ;;  %s2227_s16 = smov (!%p305_p2), 24   ;;  %s2228_s17 = smov (!%p305_p2), 80  }
   0xd   : > { %s2230_s19 = smov (!%p305_p2), 96   ;;  %s2231_s20 = smov (!%p305_p2), 48  }
   0xe   : > { %s2234_s23 = smov (!%p305_p2), 112   ;;  %s2235_s24 = smov (!%p305_p2), 88  }
   0xf   : > { %s3065_s18 = smov (!%p357_p3, %s1868_s18), 63  ;;  %s3067_s21 = smov (!%p351_p4, %s1866_s21), 7  ;;  %2065 = vmatpush3.bf16.msra.mxu0 %v2062_v7 }
  0x10   : > { %s1869_s22 = sshll.u32 %s3065_s18, 3  ;;  %s2329_s26 = sshll.u32 %s3067_s21, 3 }
  0x11   : > { %s2314_s25 = scalar_lea.vmem %s3021_s1, %s1869_s22  ;;  %s2343_s29 = scalar_lea.vmem %s3020_s0, %s2329_s26 }
  0x12   : > { %v2317_v8 = vld [vmem:[%s2314_s25] sm:$0xff]  ;;  %v2322_v9 = vld [vmem:[%s2314_s25 + $0x8] sm:$0xff]  ;;  %v2325_v10 = vld [vmem:[%s2314_s25 + $0x10] sm:$0xff]  ;;  %s2229_s18 = smov 40   ;;  %s2232_s21 = smov 104  }
  0x13   : > { %2010 = vmatprep.mubr.msk.f32.mxu0 %vm410_vm0, %v2317_v8  ;;  %v2334_v11 = vld [vmem:[%s2314_s25 + $0x18] sm:$0xff]  ;;  %v2337_v12 = vld [vmem:[%s2314_s25 + $0x20] sm:$0xff]  ;;  %v2350_v13 = vld [vmem:[%s2314_s25 + $0x28] sm:$0xff]  ;;  %s2233_s22 = smov 72  }
  0x14   : > { %2011 = vmatmul.mubr.msk.f32.vlgmr.msra.gmra.mrb[0].mxu0 %vm410_vm0, %v2322_v9  ;;  %v2353_v14 = vld [vmem:[%s2314_s25 + $0x30] sm:$0xff]  ;;  %v902_v15 = vld [vmem:[%s2343_s29] sm:$0xff]  ;;  %v2361_v16 = vld [vmem:[%s2314_s25 + $0x38] sm:$0xff] }
  0x15   : > { %2013 = vmatprep.mubr.msk.f32.mxu0 %vm410_vm0, %v2325_v10  ;;  %907 = vperm.xlu1 %2131, %v902_v15   ;;  %v2364_v17 = vld [vmem:[%s2314_s25 + $0x40] sm:$0xff]  ;;  %v2371_v18 = vld [vmem:[%s2314_s25 + $0x48] sm:$0xff]  ;;  %v2374_v19 = vld [vmem:[%s2314_s25 + $0x50] sm:$0xff] }
  0x16   : > { %v2381_v20 = vld [vmem:[%s2314_s25 + $0x58] sm:$0xff]  ;;  %v2384_v21 = vld [vmem:[%s2314_s25 + $0x60] sm:$0xff]  ;;  %v2391_v22 = vld [vmem:[%s2314_s25 + $0x68] sm:$0xff] }
  0x17   : > { %v2394_v23 = vld [vmem:[%s2314_s25 + $0x70] sm:$0xff]  ;;  %v2401_v24 = vld [vmem:[%s2314_s25 + $0x78] sm:$0xff]  ;;  %v2404_v25 = vld [vmem:[%s2314_s25 + $0x80] sm:$0xff] }
  0x18   : > { %2014 = vmatmul.mubr.msk.f32.gmra.mrb[2].mxu0 %vm410_vm0, %v2334_v11  ;;  %v2411_v26 = vld [vmem:[%s2314_s25 + $0x88] sm:$0xff]  ;;  %v2414_v27 = vld [vmem:[%s2314_s25 + $0x90] sm:$0xff]  ;;  %v2421_v28 = vld [vmem:[%s2314_s25 + $0x98] sm:$0xff] }
  0x19   : > { %2016 = vmatprep.mubr.msk.f32.mxu0 %vm410_vm0, %v2337_v12  ;;  %v2424_v29 = vld [vmem:[%s2314_s25 + $0xa0] sm:$0xff]  ;;  %v2431_v30 = vld [vmem:[%s2314_s25 + $0xa8] sm:$0xff]  ;;  %v2434_v31 = vld [vmem:[%s2314_s25 + $0xb0] sm:$0xff] }
  0x1a   : > { %v2441_v32 = vld [vmem:[%s2314_s25 + $0xb8] sm:$0xff]  ;;  %v2444_v33 = vld [vmem:[%s2314_s25 + $0xc0] sm:$0xff]  ;;  %v2451_v34 = vld [vmem:[%s2314_s25 + $0xc8] sm:$0xff] }
  0x1b   : > { %v2454_v35 = vld [vmem:[%s2314_s25 + $0xd0] sm:$0xff]  ;;  %v2461_v36 = vld [vmem:[%s2314_s25 + $0xd8] sm:$0xff]  ;;  %v2464_v37 = vld [vmem:[%s2314_s25 + $0xe0] sm:$0xff] }
  0x1c   : > { %2017 = vmatmul.mubr.msk.f32.gmra.mrb[4].mxu0 %vm410_vm0, %v2350_v13  ;;  %v2471_v38 = vld [vmem:[%s2314_s25 + $0xe8] sm:$0xff]  ;;  %v2474_v39 = vld [vmem:[%s2314_s25 + $0xf0] sm:$0xff]  ;;  %v2481_v40 = vld [vmem:[%s2314_s25 + $0xf8] sm:$0xff]  ;;  %s2236_s25 = smov 120  }
  0x1d   : > { %2019 = vmatprep.mubr.msk.f32.mxu0 %vm410_vm0, %v2353_v14 }
  0x20   : > { %2020 = vmatmul.mubr.msk.f32.gmra.mrb[6].mxu0 %vm410_vm0, %v2361_v16 }
  0x21   : > { %2022 = vmatprep.mubr.msk.f32.mxu0 %vm410_vm0, %v2364_v17 }
  0x24   : > { %2023 = vmatmul.mubr.msk.f32.gmra.mrb[8].mxu0 %vm410_vm0, %v2371_v18 }
  0x25   : > { %2025 = vmatprep.mubr.msk.f32.mxu0 %vm410_vm0, %v2374_v19 }
  0x28   : > { %2026 = vmatmul.mubr.msk.f32.gmra.mrb[10].mxu0 %vm410_vm0, %v2381_v20 }
  0x29   : > { %2028 = vmatprep.mubr.msk.f32.mxu0 %vm410_vm0, %v2384_v21 }
  0x2c   : > { %2029 = vmatmul.mubr.msk.f32.gmra.mrb[12].mxu0 %vm410_vm0, %v2391_v22 }
  0x2d   : > { %2031 = vmatprep.mubr.msk.f32.mxu0 %vm410_vm0, %v2394_v23 }
  0x30   : > { %2032 = vmatmul.mubr.msk.f32.gmra.mrb[14].mxu0 %vm410_vm0, %v2401_v24 }
  0x31   : > { %2034 = vmatprep.mubr.msk.f32.mxu0 %vm410_vm0, %v2404_v25 }
  0x34   : > { %2035 = vmatmul.mubr.msk.f32.gmra.mrb[16].mxu0 %vm410_vm0, %v2411_v26 }
  0x35   : > { %2037 = vmatprep.mubr.msk.f32.mxu0 %vm410_vm0, %v2414_v27 }
  0x38   : > { %2038 = vmatmul.mubr.msk.f32.gmra.mrb[18].mxu0 %vm410_vm0, %v2421_v28 }
  0x39   : > { %2040 = vmatprep.mubr.msk.f32.mxu0 %vm410_vm0, %v2424_v29 }
  0x3c   : > { %2041 = vmatmul.mubr.msk.f32.gmra.mrb[20].mxu0 %vm410_vm0, %v2431_v30 }
  0x3d   : > { %2043 = vmatprep.mubr.msk.f32.mxu0 %vm410_vm0, %v2434_v31 }
  0x40   : > { %2044 = vmatmul.mubr.msk.f32.gmra.mrb[22].mxu0 %vm410_vm0, %v2441_v32 }
  0x41   : > { %2046 = vmatprep.mubr.msk.f32.mxu0 %vm410_vm0, %v2444_v33 }
  0x44   : > { %2047 = vmatmul.mubr.msk.f32.gmra.mrb[24].mxu0 %vm410_vm0, %v2451_v34 }
  0x45   : > { %2049 = vmatprep.mubr.msk.f32.mxu0 %vm410_vm0, %v2454_v35 }
  0x48   : > { %2050 = vmatmul.mubr.msk.f32.gmra.mrb[26].mxu0 %vm410_vm0, %v2461_v36 }
  0x49   : > { %2052 = vmatprep.mubr.msk.f32.mxu0 %vm410_vm0, %v2464_v37 }
  0x4c   : > { %2053 = vmatmul.mubr.msk.f32.gmra.mrb[28].mxu0 %vm410_vm0, %v2471_v38 }
  0x4d   : > { %2055 = vmatprep.mubr.msk.f32.mxu0 %vm410_vm0, %v2474_v39 }
  0x50   : > { %2056 = vmatmul.mubr.msk.f32.gmra.mrb[30].mxu0 %vm410_vm0, %v2481_v40 }
  0xe7   : > { %v2012_v41 = vpop.f32.mrb[0].mxu0 }
  0xe8   : > { %2133 = vtanh.f32 %v2012_v41  ;;  %v573_v42 = vpop.f32.mrb[1].mxu0 }
  0xe9   : > { %2135 = vtanh.f32 %v573_v42 }
  0xeb   : > { %v2015_v43 = vpop.f32.mrb[2].mxu0 }
  0xec   : > { %2137 = vtanh.f32 %v2015_v43  ;;  %v583_v44 = vpop.f32.mrb[3].mxu0 }
  0xed   : > { %2139 = vtanh.f32 %v583_v44 }
  0xef   : > { %v2018_v45 = vpop.f32.mrb[4].mxu0 }
  0xf0   : > { %2141 = vtanh.f32 %v2018_v45  ;;  %v593_v46 = vpop.f32.mrb[5].mxu0 }
  0xf1   : > { %2143 = vtanh.f32 %v593_v46 }
  0xf2   : > { %v2134_v48 = vpop.eup %2133 }
  0xf3   : > { %v2136_v49 = vpop.eup %2135  ;;  %v2021_v50 = vpop.f32.mrb[6].mxu0  ;;  %v772_v51 = vmul.f32 %v2134_v48, %v2488_v47 }
  0xf4   : > { %2145 = vtanh.f32 %v2021_v50  ;;  %v603_v52 = vpop.f32.mrb[7].mxu0  ;;  %v771_v54 = vmul.f32 %v2136_v49, %v2488_v47 }
  0xf5   : > { %2147 = vtanh.f32 %v603_v52  ;;  %v807_v53 = vsel %vm803_vm1, %v772_v51, 0.0 }
  0xf6   : > { %v2138_v55 = vpop.eup %2137  ;;  %808 = vadd.xlane.f32.xlu0 %v807_v53  ;;  %v804_v60 = vsel %vm803_vm1, %v771_v54, 0.0 }
  0xf7   : > { %v2140_v56 = vpop.eup %2139  ;;  %v2024_v57 = vpop.f32.mrb[8].mxu0  ;;  %v774_v58 = vmul.f32 %v2138_v55, %v2488_v47 }
  0xf8   : > { %2149 = vtanh.f32 %v2024_v57  ;;  %v613_v59 = vpop.f32.mrb[9].mxu0  ;;  %v773_v62 = vmul.f32 %v2140_v56, %v2488_v47 }
  0xf9   : > { %2151 = vtanh.f32 %v613_v59  ;;  %v813_v61 = vsel %vm803_vm1, %v774_v58, 0.0 }
  0xfa   : > { %v2142_v63 = vpop.eup %2141  ;;  %805 = vadd.xlane.f32.xlu0 %v804_v60  ;;  %814 = vadd.xlane.f32.xlu1 %v813_v61  ;;  %v810_v4 = vsel %vm803_vm1, %v773_v62, 0.0 }
  0xfb   : > { %v2144_v0 = vpop.eup %2143  ;;  %v2027_v1 = vpop.f32.mrb[10].mxu0  ;;  %v776_v5 = vmul.f32 %v2142_v63, %v2488_v47 }
  0xfc   : > { %2153 = vtanh.f32 %v2027_v1  ;;  %v623_v2 = vpop.f32.mrb[11].mxu0  ;;  %v775_v3 = vmul.f32 %v2144_v0, %v2488_v47 }
  0xfd   : > { %2155 = vtanh.f32 %v623_v2  ;;  %v819_v44 = vsel %vm803_vm1, %v776_v5, 0.0 }
  0xfe   : > { %v2146_v6 = vpop.eup %2145  ;;  %811 = vadd.xlane.f32.xlu1 %v810_v4  ;;  %v816_v7 = vsel %vm803_vm1, %v775_v3, 0.0 }
  0xff   : > { %v2148_v15 = vpop.eup %2147  ;;  %817 = vadd.xlane.f32.xlu0 %v816_v7  ;;  %v2030_v41 = vpop.f32.mrb[12].mxu0  ;;  %v778_v42 = vmul.f32 %v2146_v6, %v2488_v47 }
 0x100   : > { %2157 = vtanh.f32 %v2030_v41  ;;  %v633_v43 = vpop.f32.mrb[13].mxu0  ;;  %v777_v48 = vmul.f32 %v2148_v15, %v2488_v47 }
 0x101   : > { %2159 = vtanh.f32 %v633_v43  ;;  %v825_v45 = vsel %vm803_vm1, %v778_v42, 0.0 }
 0x102   : > { %v2150_v46 = vpop.eup %2149  ;;  %820 = vadd.xlane.f32.xlu1 %v819_v44  ;;  %v822_v55 = vsel %vm803_vm1, %v777_v48, 0.0 }
 0x103   : > { %v2152_v49 = vpop.eup %2151  ;;  %826 = vadd.xlane.f32.xlu0 %v825_v45  ;;  %v2033_v50 = vpop.f32.mrb[14].mxu0  ;;  %v780_v51 = vmul.f32 %v2150_v46, %v2488_v47 }
 0x104   : > { %2161 = vtanh.f32 %v2033_v50  ;;  %v643_v52 = vpop.f32.mrb[15].mxu0  ;;  %v779_v56 = vmul.f32 %v2152_v49, %v2488_v47 }
 0x105   : > { %2163 = vtanh.f32 %v643_v52  ;;  %v831_v53 = vsel %vm803_vm1, %v780_v51, 0.0 }
 0x106   : > { %v2154_v54 = vpop.eup %2153  ;;  %832 = vadd.xlane.f32.xlu1 %v831_v53  ;;  %v828_v0 = vsel %vm803_vm1, %v779_v56, 0.0 }
 0x107   : > { %v2156_v57 = vpop.eup %2155  ;;  %823 = vadd.xlane.f32.xlu0 %v822_v55  ;;  %v2036_v58 = vpop.f32.mrb[16].mxu0  ;;  %v782_v59 = vmul.f32 %v2154_v54, %v2488_v47 }
 0x108   : > { %2165 = vtanh.f32 %v2036_v58  ;;  %v653_v60 = vpop.f32.mrb[17].mxu0  ;;  %v781_v62 = vmul.f32 %v2156_v57, %v2488_v47 }
 0x109   : > { %2167 = vtanh.f32 %v653_v60  ;;  %v837_v61 = vsel %vm803_vm1, %v782_v59, 0.0 }
 0x10a   : > { %v2158_v63 = vpop.eup %2157  ;;  %838 = vadd.xlane.f32.xlu1 %v837_v61  ;;  %v834_v5 = vsel %vm803_vm1, %v781_v62, 0.0 }
 0x10b   : > { %v2160_v1 = vpop.eup %2159  ;;  %829 = vadd.xlane.f32.xlu0 %v828_v0  ;;  %v2039_v2 = vpop.f32.mrb[18].mxu0  ;;  %v784_v6 = vmul.f32 %v2158_v63, %v2488_v47 }
 0x10c   : > { %2169 = vtanh.f32 %v2039_v2  ;;  %v663_v3 = vpop.f32.mrb[19].mxu0  ;;  %v783_v4 = vmul.f32 %v2160_v1, %v2488_v47 }
 0x10d   : > { %2171 = vtanh.f32 %v663_v3  ;;  %v843_v45 = vsel %vm803_vm1, %v784_v6, 0.0 }
 0x10e   : > { %v2162_v7 = vpop.eup %2161  ;;  %835 = vadd.xlane.f32.xlu1 %v834_v5  ;;  %v840_v15 = vsel %vm803_vm1, %v783_v4, 0.0 }
 0x10f   : > { %v2164_v41 = vpop.eup %2163  ;;  %841 = vadd.xlane.f32.xlu0 %v840_v15  ;;  %v2042_v42 = vpop.f32.mrb[20].mxu0  ;;  %v786_v43 = vmul.f32 %v2162_v7, %v2488_v47 }
 0x110   : > { %2173 = vtanh.f32 %v2042_v42  ;;  %v673_v44 = vpop.f32.mrb[21].mxu0  ;;  %v785_v49 = vmul.f32 %v2164_v41, %v2488_v47 }
 0x111   : > { %2175 = vtanh.f32 %v673_v44  ;;  %v849_v46 = vsel %vm803_vm1, %v786_v43, 0.0 }
 0x112   : > { %v2166_v48 = vpop.eup %2165  ;;  %844 = vadd.xlane.f32.xlu1 %v843_v45  ;;  %v846_v56 = vsel %vm803_vm1, %v785_v49, 0.0 }
 0x113   : > { %v2168_v50 = vpop.eup %2167  ;;  %850 = vadd.xlane.f32.xlu0 %v849_v46  ;;  %v2045_v51 = vpop.f32.mrb[22].mxu0  ;;  %v788_v52 = vmul.f32 %v2166_v48, %v2488_v47 }
 0x114   : > { %2177 = vtanh.f32 %v2045_v51  ;;  %v683_v53 = vpop.f32.mrb[23].mxu0  ;;  %v787_v57 = vmul.f32 %v2168_v50, %v2488_v47 }
 0x115   : > { %2179 = vtanh.f32 %v683_v53  ;;  %v855_v54 = vsel %vm803_vm1, %v788_v52, 0.0 }
 0x116   : > { %v2170_v55 = vpop.eup %2169  ;;  %856 = vadd.xlane.f32.xlu1 %v855_v54  ;;  %v852_v1 = vsel %vm803_vm1, %v787_v57, 0.0 }
 0x117   : > { %v2172_v58 = vpop.eup %2171  ;;  %847 = vadd.xlane.f32.xlu0 %v846_v56  ;;  %v2048_v59 = vpop.f32.mrb[24].mxu0  ;;  %v790_v60 = vmul.f32 %v2170_v55, %v2488_v47 }
 0x118   : > { %2181 = vtanh.f32 %v2048_v59  ;;  %v693_v61 = vpop.f32.mrb[25].mxu0  ;;  %v789_v63 = vmul.f32 %v2172_v58, %v2488_v47 }
 0x119   : > { %2183 = vtanh.f32 %v693_v61  ;;  %v861_v62 = vsel %vm803_vm1, %v790_v60, 0.0 }
 0x11a   : > { %v2174_v0 = vpop.eup %2173  ;;  %862 = vadd.xlane.f32.xlu1 %v861_v62  ;;  %v858_v6 = vsel %vm803_vm1, %v789_v63, 0.0 }
 0x11b   : > { %v2176_v2 = vpop.eup %2175  ;;  %853 = vadd.xlane.f32.xlu0 %v852_v1  ;;  %v2051_v3 = vpop.f32.mrb[26].mxu0  ;;  %v792_v7 = vmul.f32 %v2174_v0, %v2488_v47 }
 0x11c   : > { %2185 = vtanh.f32 %v2051_v3  ;;  %v703_v4 = vpop.f32.mrb[27].mxu0  ;;  %v791_v5 = vmul.f32 %v2176_v2, %v2488_v47 }
 0x11d   : > { %2187 = vtanh.f32 %v703_v4  ;;  %v867_v46 = vsel %vm803_vm1, %v792_v7, 0.0 }
 0x11e   : > { %v2178_v15 = vpop.eup %2177  ;;  %859 = vadd.xlane.f32.xlu1 %v858_v6  ;;  %v864_v41 = vsel %vm803_vm1, %v791_v5, 0.0 }
 0x11f   : > { %v2180_v42 = vpop.eup %2179  ;;  %865 = vadd.xlane.f32.xlu0 %v864_v41  ;;  %v2054_v43 = vpop.f32.mrb[28].mxu0  ;;  %v794_v44 = vmul.f32 %v2178_v15, %v2488_v47 }
 0x120   : > { %2189 = vtanh.f32 %v2054_v43  ;;  %v713_v45 = vpop.f32.mrb[29].mxu0  ;;  %v793_v50 = vmul.f32 %v2180_v42, %v2488_v47 }
 0x121   : > { %2191 = vtanh.f32 %v713_v45  ;;  %v873_v48 = vsel %vm803_vm1, %v794_v44, 0.0  ;;  %v904_v45 = vld [vmem:[%s2343_s29 + $0x10] sm:$0xff] }
 0x122   : > { %v2182_v49 = vpop.eup %2181  ;;  %868 = vadd.xlane.f32.xlu1 %v867_v46  ;;  %v870_v57 = vsel %vm803_vm1, %v793_v50, 0.0  ;;  %v905_v46 = vld [vmem:[%s2343_s29 + $0x18] sm:$0xff] }
 0x123   : > { %v2184_v51 = vpop.eup %2183  ;;  %874 = vadd.xlane.f32.xlu0 %v873_v48  ;;  %v796_v52 = vmul.f32 %v2182_v49, %v2488_v47  ;;  %v2057_v53 = vpop.f32.mrb[30].mxu0  ;;  %v903_v48 = vld [vmem:[%s2343_s29 + $0x8] sm:$0xff]  ;;  %v900_v49 = vlaneseq }
 0x124   : > { %2193 = vtanh.f32 %v2057_v53  ;;  %v723_v54 = vpop.f32.mrb[31].mxu0  ;;  %v795_v58 = vmul.f32 %v2184_v51, %v2488_v47  ;;  %v908_v51 = vpop.permute.xlu1 %907 }
 0x125   : > { %v879_v55 = vsel %vm803_vm1, %v796_v52, 0.0  ;;  %2195 = vtanh.f32 %v723_v54  ;;  %v2557_v50 = vshrl.u32 %v900_v49, 7  ;;  %v2559_v52 = vand.u32 127, %v900_v49 }
 0x126   : > { %v2186_v56 = vpop.eup %2185  ;;  %880 = vadd.xlane.f32.xlu1 %v879_v55  ;;  %v876_v0 = vsel %vm803_vm1, %v795_v58, 0.0 }
 0x127   : > { %v2188_v59 = vpop.eup %2187  ;;  %871 = vadd.xlane.f32.xlu0 %v870_v57  ;;  %v798_v60 = vmul.f32 %v2186_v56, %v2488_v47  ;;  %v2563_v53 = vsub.s32 %v2559_v52, %v2557_v50  ;;  %vm918_vm10 = vcmp.lt.s32.totalorder %v2559_v52, %v908_v51 }
 0x128   : > { %v797_v62 = vmul.f32 %v2188_v59, %v2488_v47 }
 0x129   : > { %v885_v61 = vsel %vm803_vm1, %v798_v60, 0.0 }
 0x12a   : > { %v2190_v63 = vpop.eup %2189  ;;  %886 = vadd.xlane.f32.xlu1 %v885_v61  ;;  %v882_v3 = vsel %vm803_vm1, %v797_v62, 0.0 }
 0x12b   : > { %v2192_v1 = vpop.eup %2191  ;;  %877 = vadd.xlane.f32.xlu0 %v876_v0  ;;  %v800_v2 = vmul.f32 %v2190_v63, %v2488_v47 }
 0x12c   : > { %v799_v6 = vmul.f32 %v2192_v1, %v2488_v47 }
 0x12d   : > { %v891_v4 = vsel %vm803_vm1, %v800_v2, 0.0 }
 0x12e   : > { %v2194_v5 = vpop.eup %2193  ;;  %883 = vadd.xlane.f32.xlu1 %v882_v3  ;;  %v888_v42 = vsel %vm803_vm1, %v799_v6, 0.0 }
 0x12f   : > { %v2196_v7 = vpop.eup %2195  ;;  %892 = vadd.xlane.f32.xlu0 %v891_v4  ;;  %v802_v15 = vmul.f32 %v2194_v5, %v2488_v47 }
 0x130   : > { %v801_v41 = vmul.f32 %v2196_v7, %v2488_v47 }
 0x131   : > { %v897_v43 = vsel %vm803_vm1, %v802_v15, 0.0 }
 0x132   : > { %v894_v44 = vsel %vm803_vm1, %v801_v41, 0.0 }
 0x133   : > { %889 = vadd.xlane.f32.xlu0 %v888_v42 }
 0x137   : > { %898 = vadd.xlane.f32.xlu0 %v897_v43 }
 0x13b   : > { %895 = vadd.xlane.f32.xlu0 %v894_v44 }
 0x13f   : > { %913 = vperm.xlu1 %2131, %v904_v45  }
 0x143   : > { %916 = vperm.xlu1 %2131, %v905_v46  }
 0x151   : > { %910 = vperm.xlu0 %2132, %v903_v48  }
 0x183   : > { %v809_v47 = vpop.xlane.xlu0 %808 }
 0x184   : > { %v961_v57 = vrot.slane %v809_v47, %v2563_v53 }
 0x187   : > { %v806_v54 = vpop.xlane.xlu0 %805  ;;  %v815_v55 = vpop.xlane.xlu1 %814 }
 0x188   : > { %v957_v56 = vrot.slane %v806_v54, %v2563_v53  ;;  %v969_v62 = vrot.slane %v815_v55, %v2563_v53 }
 0x18a   : > { %v1083_v61 = vsel %vm1082_vm2, %v961_v57, %v957_v56 }
 0x18b   : > { %v812_v58 = vpop.xlane.xlu1 %811 }
 0x18c   : > { %v965_v59 = vrot.slane %v812_v58, %v2563_v53  ;;  %v818_v60 = vpop.xlane.xlu0 %817 }
 0x18d   : > { %v973_v0 = vrot.slane %v818_v60, %v2563_v53 }
 0x18e   : > { %v1085_v63 = vsel %vm1084_vm3, %v965_v59, %v1083_v61 }
 0x18f   : > { %v821_v1 = vpop.xlane.xlu1 %820  ;;  %v1087_v2 = vsel %vm1086_vm4, %v969_v62, %v1085_v63 }
 0x190   : > { %v827_v3 = vpop.xlane.xlu0 %826  ;;  %v977_v4 = vrot.slane %v821_v1, %v2563_v53  ;;  %v1089_v5 = vsel %vm1088_vm5, %v973_v0, %v1087_v2 }
 0x191   : > { %v985_v42 = vrot.slane %v827_v3, %v2563_v53 }
 0x192   : > { %v1091_v41 = vsel %vm1090_vm6, %v977_v4, %v1089_v5 }
 0x193   : > { %v2575_v6 = vpop.xlane.xlu1 %832 }
 0x194   : > { %v824_v7 = vpop.xlane.xlu0 %823 }
 0x195   : > { %v981_v15 = vrot.slane %v824_v7, %v2563_v53 }
 0x197   : > { %v2580_v43 = vpop.xlane.xlu1 %838  ;;  %v1093_v44 = vsel %vm1092_vm7, %v981_v15, %v1091_v41 }
 0x198   : > { %v830_v45 = vpop.xlane.xlu0 %829  ;;  %v1095_v46 = vsel %vm1094_vm8, %v985_v42, %v1093_v44 }
 0x199   : > { %v2585_v48 = vsel %vm918_vm10, %v1095_v46, -1e+30 }
 0x19a   : > { %v1126_v49 = vsel %vm1125_vm9, %v2585_v48, -inf }
 0x19b   : > { %1127 = vmax.xlane.f32.xlu1 %v1126_v49  ;;  %v836_v47 = vpop.xlane.xlu1 %835 }
 0x19c   : > { %v2589_v54 = vpop.xlane.xlu0 %841 }
 0x19f   : > { %v2591_v55 = vpop.xlane.xlu1 %844 }
 0x1a0   : > { %v2593_v56 = vpop.xlane.xlu0 %850 }
 0x1a3   : > { %v857_v57 = vpop.xlane.xlu1 %856 }
 0x1a4   : > { %v2595_v58 = vpop.xlane.xlu0 %847  ;;  %v1025_v1 = vrot.slane %v857_v57, %v2563_v53 }
 0x1a7   : > { %v863_v51 = vpop.xlane.xlu1 %862 }
 0x1a8   : > { %v854_v59 = vpop.xlane.xlu0 %853  ;;  %v1033_v7 = vrot.slane %v863_v51, %v2563_v53 }
 0x1a9   : > { %v1021_v62 = vrot.slane %v854_v59, %v2563_v53 }
 0x1ab   : > { %v860_v60 = vpop.xlane.xlu1 %859  ;;  %v1103_v3 = vsel %vm1082_vm2, %v1025_v1, %v1021_v62 }
 0x1ac   : > { %v866_v61 = vpop.xlane.xlu0 %865  ;;  %v1029_v63 = vrot.slane %v860_v60, %v2563_v53 }
 0x1ad   : > { %v1037_v41 = vrot.slane %v866_v61, %v2563_v53 }
 0x1ae   : > { %v1104_v4 = vsel %vm1084_vm3, %v1029_v63, %v1103_v3  ;;  %v989_v3 = vrot.slane %v830_v45, %v2563_v53 }
 0x1af   : > { %v869_v0 = vpop.xlane.xlu1 %868  ;;  %v1105_v42 = vsel %vm1086_vm4, %v1033_v7, %v1104_v4  ;;  %v997_v7 = vrot.slane %v836_v47, %v2563_v53 }
 0x1b0   : > { %v875_v2 = vpop.xlane.xlu0 %874  ;;  %v1041_v46 = vrot.slane %v869_v0, %v2563_v53  ;;  %v1106_v59 = vsel %vm1088_vm5, %v1037_v41, %v1105_v42 }
 0x1b1   : > { %v1049_v51 = vrot.slane %v875_v2, %v2563_v53 }
 0x1b2   : > { %v1107_v62 = vsel %vm1090_vm6, %v1041_v46, %v1106_v59  ;;  %v993_v46 = vrot.slane %v2575_v6, %v2563_v53  ;;  %v1001_v6 = vrot.slane %v2580_v43, %v2563_v53 }
 0x1b3   : > { %v881_v5 = vpop.xlane.xlu1 %880 }
 0x1b4   : > { %v872_v15 = vpop.xlane.xlu0 %871  ;;  %v1057_v41 = vrot.slane %v881_v5, %v2563_v53  ;;  %v1096_v59 = vsel %vm1082_vm2, %v993_v46, %v989_v3 }
 0x1b5   : > { %v1045_v57 = vrot.slane %v872_v15, %v2563_v53 }
 0x1b7   : > { %v887_v44 = vpop.xlane.xlu1 %886  ;;  %v1108_v1 = vsel %vm1092_vm7, %v1045_v57, %v1107_v62  ;;  %v1097_v57 = vsel %vm1084_vm3, %v997_v7, %v1096_v59  ;;  %v1009_v7 = vrot.slane %v2591_v55, %v2563_v53 }
 0x1b8   : > { %v878_v49 = vpop.xlane.xlu0 %877  ;;  %v1109_v42 = vsel %vm1094_vm8, %v1049_v51, %v1108_v1  ;;  %v1005_v1 = vrot.slane %v2589_v54, %v2563_v53  ;;  %v1013_v54 = vrot.slane %v2595_v58, %v2563_v53  ;;  %v1017_v58 = vrot.slane %v2593_v56, %v2563_v53 }
 0x1b9   : > { %v1053_v61 = vrot.slane %v878_v49, %v2563_v53 }
 0x1bb   : > { %v884_v60 = vpop.xlane.xlu1 %883  ;;  %v1110_v49 = vsel %vm1082_vm2, %v1057_v41, %v1053_v61  ;;  %v1098_v61 = vsel %vm1086_vm4, %v1001_v6, %v1097_v57  ;;  %vm3035_vm2 = vcmask 392192  }
 0x1bc   : > { %v893_v63 = vpop.xlane.xlu0 %892  ;;  %v1061_v4 = vrot.slane %v884_v60, %v2563_v53  ;;  %v1065_v60 = vrot.slane %v887_v44, %v2563_v53  ;;  %v1099_v43 = vsel %vm1088_vm5, %v1005_v1, %v1098_v61  ;;  %v2072_v61 = vpack.c.bf16 %v2334_v11, %v2325_v10 }
 0x1bd   : > { %v1100_v55 = vsel %vm1090_vm6, %v1009_v7, %v1099_v43  ;;  %v2082_v11 = vpack.c.bf16 %v2451_v34, %v2444_v33  ;;  %v1196_v43 = vadd.s32 1, %v2557_v50 }
 0x1be   : > { %v1111_v47 = vsel %vm1084_vm3, %v1061_v4, %v1110_v49  ;;  %v1073_v4 = vrot.slane %v893_v63, %v2563_v53  ;;  %v1101_v59 = vsel %vm1092_vm7, %v1013_v54, %v1100_v55  ;;  %vm3033_vm3 = vcmask 457728  }
 0x1bf   : > { %v914_v0 = vpop.permute.xlu1 %913  ;;  %v1112_v51 = vsel %vm1086_vm4, %v1065_v60, %v1111_v47  ;;  %vm3031_vm4 = vcmask 523264   ;;  %v2826_v55 = vadd.s32 128, %v2559_v52 }
 0x1c0   : > { %vm920_vm11 = vcmp.lt.s32.totalorder %v2559_v52, %v914_v0  ;;  %v890_v15 = vpop.xlane.xlu0 %889 }
 0x1c1   : > { %v2620_v2 = vsel %vm920_vm11, %v1109_v42, -1e+30  ;;  %v1069_v5 = vrot.slane %v890_v15, %v2563_v53 }
 0x1c2   : > { %v1132_v45 = vsel %vm1125_vm9, %v2620_v2, -inf }
 0x1c3   : > { %1133 = vmax.xlane.f32.xlu1 %v1132_v45  ;;  %v1113_v3 = vsel %vm1088_vm5, %v1069_v5, %v1112_v51  ;;  %v917_v44 = vpop.permute.xlu1 %916  ;;  %v1102_v5 = vsel %vm1094_vm8, %v1017_v58, %v1101_v59  ;;  %v2070_v51 = vpack.c.bf16 %v2421_v28, %v2414_v27  ;;  %vm3030_vm5 = vcmask 588800  }
 0x1c4   : > { %v899_v62 = vpop.xlane.xlu0 %898  ;;  %v1114_v42 = vsel %vm1090_vm6, %v1073_v4, %v1113_v3  ;;  %vm921_vm12 = vcmp.lt.s32.totalorder %v2559_v52, %v917_v44  ;;  %vm3032_vm6 = vcmask 654336  }
 0x1c5   : > { %v1081_v15 = vrot.slane %v899_v62, %v2563_v53  ;;  %v2066_v62 = vpack.c.bf16 %v2411_v26, %v2404_v25  ;;  %v2074_v25 = vpack.c.bf16 %v2431_v30, %v2424_v29  ;;  %v2076_v26 = vpack.c.bf16 %v2350_v13, %v2337_v12 }
 0x1c6   : > { %v2084_v12 = vpack.c.bf16 %v2371_v18, %v2364_v17  ;;  %v2086_v13 = vpack.c.bf16 %v2461_v36, %v2454_v35  ;;  %v2092_v17 = vpack.c.bf16 %v2391_v22, %v2384_v21  ;;  %v2094_v18 = vpack.c.bf16 %v2481_v40, %v2474_v39 }
 0x1c7   : > { %2067 = vmatprep.subr.bf16.mxu1 %v2066_v62 }
 0x1c8   : > { %v896_v0 = vpop.xlane.xlu0 %895 }
 0x1c9   : > { %v1077_v41 = vrot.slane %v896_v0, %v2563_v53  ;;  %v2068_v53 = vpack.c.bf16 %v2322_v9, %v2317_v8  ;;  %v2078_v8 = vpack.c.bf16 %v2441_v32, %v2434_v31  ;;  %v2080_v9 = vpack.c.bf16 %v2361_v16, %v2353_v14 }
 0x1ca   : > { %v2088_v14 = vpack.c.bf16 %v2381_v20, %v2374_v19  ;;  %v2090_v16 = vpack.c.bf16 %v2471_v38, %v2464_v37  ;;  %v2096_v19 = vpack.c.bf16 %v2401_v24, %v2394_v23 }
 0x1cb   : > { %v1115_v46 = vsel %vm1092_vm7, %v1077_v41, %v1114_v42  ;;  %2069 = vmatpush3.bf16.msra.mxu1 %v2068_v53  ;;  %vm3034_vm7 = vcmask 719872  }
 0x1cc   : > { %v1116_v63 = vsel %vm1094_vm8, %v1081_v15, %v1115_v46  ;;  %2071 = vmatprep.subr.bf16.mxu1 %v2070_v51  ;;  %vm1456_vm8 = vcmask 785408  }
 0x1cd   : > { %v2650_v49 = vsel %vm921_vm12, %v1116_v63, -1e+30  ;;  %vm1461_vm12 = vcmask 850944  }
 0x1ce   : > { %v1135_v45 = vsel %vm1125_vm9, %v2650_v49, -inf }
 0x1cf   : > { %1136 = vmax.xlane.f32.xlu1 %v1135_v45  ;;  %2073 = vmatpush3.bf16.msra.mxu1 %v2072_v61  ;;  %v1200_v45 = vmul.u32 8, %v1196_v43 }
 0x1d0   : > { %v911_v47 = vpop.permute.xlu0 %910  ;;  %2075 = vmatprep.subr.bf16.mxu1 %v2074_v25 }
 0x1d1   : > { %vm919_vm13 = vcmp.lt.s32.totalorder %v2559_v52, %v911_v47  ;;  %vm2839_vm11 = vcmp.lt.s32.totalorder %v2826_v55, %v1200_v45 }
 0x1d2   : > { %v2659_v57 = vsel %vm919_vm13, %v1102_v5, -1e+30  ;;  %vm1466_vm13 = vcmask 916480  }
 0x1d3   : > { %v1129_v60 = vsel %vm1125_vm9, %v2659_v57, -inf  ;;  %2077 = vmatpush3.bf16.msra.mxu1 %v2076_v26 }
 0x1d4   : > { %1130 = vmax.xlane.f32.xlu0 %v1129_v60  ;;  %2079 = vmatprep.subr.bf16.mxu1 %v2078_v8 }
 0x1d7   : > { %2081 = vmatpush3.bf16.msra.mxu1 %v2080_v9 }
 0x1d8   : > { %2083 = vmatprep.subr.bf16.mxu1 %v2082_v11 }
 0x1db   : > { %2085 = vmatpush3.bf16.msra.mxu1 %v2084_v12 }
 0x1dc   : > { %2087 = vmatprep.subr.bf16.mxu1 %v2086_v13 }
 0x1df   : > { %2089 = vmatpush3.bf16.msra.mxu1 %v2088_v14 }
 0x1e0   : > { %2091 = vmatprep.subr.bf16.mxu1 %v2090_v16 }
 0x1e3   : > { %2093 = vmatpush3.bf16.msra.mxu1 %v2092_v17 }
 0x1e4   : > { %2095 = vmatprep.subr.bf16.mxu1 %v2094_v18 }
 0x1e7   : > { %2097 = vmatpush3.bf16.msra.mxu1 %v2096_v19 }
 0x228   : > { %v1128_v6 = vpop.xlane.xlu1 %1127 }
 0x229   : > { %v1138_v56 = vsub.f32 %v2585_v48, %v1128_v6 }
 0x22b   : > { %v1142_v1 = vmul.f32 1.442695, %v1138_v56 }
 0x22d   : > { %2197 = vpow2.f32 %v1142_v1 }
 0x237   : > { %v2680_v10 = vpop.eup %2197 }
 0x238   : > { %1260 = vrot.lane.b32.xlu0 %v2680_v10, %s2222_s12  ;;  %1224 = vrot.lane.b32.xlu1 %v2680_v10, %s2223_s13 }
 0x23c   : > { %1296 = vrot.lane.b32.xlu0 %v2680_v10, %s2224_s14  ;;  %1236 = vrot.lane.b32.xlu1 %v2680_v10, %s2225_s7 }
 0x240   : > { %1308 = vrot.lane.b32.xlu0 %v2680_v10, %s2226_s15  ;;  %1248 = vrot.lane.b32.xlu1 %v2680_v10, %s2227_s16 }
 0x244   : > { %1332 = vrot.lane.b32.xlu0 %v2680_v10, %s2228_s17  ;;  %1272 = vrot.lane.b32.xlu1 %v2680_v10, %s2229_s18 }
 0x248   : > { %1356 = vrot.lane.b32.xlu0 %v2680_v10, %s2230_s19  ;;  %1284 = vrot.lane.b32.xlu1 %v2680_v10, %s2231_s20 }
 0x24c   : > { %1368 = vrot.lane.b32.xlu0 %v2680_v10, %s2232_s21  ;;  %1320 = vrot.lane.b32.xlu1 %v2680_v10, %s2233_s22 }
 0x250   : > { %1380 = vrot.lane.b32.xlu0 %v2680_v10, %s2234_s23  ;;  %1344 = vrot.lane.b32.xlu1 %v2680_v10, %s2235_s24  ;;  %v1134_v23 = vpop.xlane.xlu1 %1133 }
 0x251   : > { %v1140_v24 = vsub.f32 %v2620_v2, %v1134_v23 }
 0x253   : > { %v1146_v28 = vmul.f32 1.442695, %v1140_v24 }
 0x254   : > { %1392 = vrot.lane.b32.xlu0 %v2680_v10, %s2236_s25 }
 0x25c   : > { %v1137_v30 = vpop.xlane.xlu1 %1136 }
 0x25d   : > { %v1141_v31 = vsub.f32 %v2650_v49, %v1137_v30  ;;  %v1184_v49 = vmul.u32 8, %v2557_v50 }
 0x25f   : > { %v1148_v32 = vmul.f32 1.442695, %v1141_v31  ;;  %vm2834_vm10 = vcmp.ge.s32.totalorder %v2826_v55, %v1184_v49 }
 0x261   : > { %v1131_v20 = vpop.xlane.xlu0 %1130 }
 0x262   : > { %v1139_v21 = vsub.f32 %v2659_v57, %v1131_v20 }
 0x264   : > { %v1144_v22 = vmul.f32 1.442695, %v1139_v21  ;;  %v1150_v21 = vsel %vm1125_vm9, %v2680_v10, 0.0 }
 0x266   : > { %2199 = vpow2.f32 %v1144_v22 }
 0x267   : > { %2201 = vpow2.f32 %v1146_v28 }
 0x268   : > { %2203 = vpow2.f32 %v1148_v32 }
 0x270   : > { %v2730_v27 = vpop.eup %2199 }
 0x271   : > { %1274 = vrot.lane.b32.xlu0 %v2730_v27, %s2229_s18  ;;  %1226 = vrot.lane.b32.xlu1 %v2730_v27, %s2223_s13  ;;  %v2748_v29 = vpop.eup %2201  ;;  %v1153_v61 = vsel %vm1125_vm9, %v2730_v27, 0.0 }
 0x272   : > { %v2795_v35 = vpop.eup %2203  ;;  %v1156_v25 = vsel %vm1125_vm9, %v2748_v29, 0.0 }
 0x273   : > { %v1159_v32 = vsel %vm1125_vm9, %v2795_v35, 0.0 }
 0x275   : > { %1298 = vrot.lane.b32.xlu0 %v2730_v27, %s2224_s14  ;;  %1238 = vrot.lane.b32.xlu1 %v2730_v27, %s2225_s7 }
 0x279   : > { %1370 = vrot.lane.b32.xlu0 %v2730_v27, %s2232_s21  ;;  %1250 = vrot.lane.b32.xlu1 %v2730_v27, %s2227_s16 }
 0x27d   : > { %1394 = vrot.lane.b32.xlu0 %v2730_v27, %s2236_s25  ;;  %1262 = vrot.lane.b32.xlu1 %v2730_v27, %s2222_s12 }
 0x281   : > { %1286 = vrot.lane.b32.xlu1 %v2730_v27, %s2231_s20  ;;  %1240 = vrot.lane.b32.xlu0 %v2748_v29, %s2225_s7 }
 0x285   : > { %1310 = vrot.lane.b32.xlu1 %v2730_v27, %s2226_s15  ;;  %1264 = vrot.lane.b32.xlu0 %v2748_v29, %s2222_s12 }
 0x289   : > { %1322 = vrot.lane.b32.xlu1 %v2730_v27, %s2233_s22  ;;  %1276 = vrot.lane.b32.xlu0 %v2748_v29, %s2229_s18 }
 0x28d   : > { %1334 = vrot.lane.b32.xlu1 %v2730_v27, %s2228_s17  ;;  %1288 = vrot.lane.b32.xlu0 %v2748_v29, %s2231_s20 }
 0x291   : > { %1346 = vrot.lane.b32.xlu1 %v2730_v27, %s2235_s24  ;;  %1300 = vrot.lane.b32.xlu0 %v2748_v29, %s2224_s14 }
 0x295   : > { %1358 = vrot.lane.b32.xlu1 %v2730_v27, %s2230_s19  ;;  %1312 = vrot.lane.b32.xlu0 %v2748_v29, %s2226_s15 }
 0x299   : > { %1382 = vrot.lane.b32.xlu1 %v2730_v27, %s2234_s23  ;;  %1336 = vrot.lane.b32.xlu0 %v2748_v29, %s2228_s17 }
 0x29d   : > { %1360 = vrot.lane.b32.xlu0 %v2748_v29, %s2230_s19  ;;  %1228 = vrot.lane.b32.xlu1 %v2748_v29, %s2223_s13 }
 0x2a1   : > { %1372 = vrot.lane.b32.xlu0 %v2748_v29, %s2232_s21  ;;  %1252 = vrot.lane.b32.xlu1 %v2748_v29, %s2227_s16 }
 0x2a5   : > { %1384 = vrot.lane.b32.xlu0 %v2748_v29, %s2234_s23  ;;  %1324 = vrot.lane.b32.xlu1 %v2748_v29, %s2233_s22 }
 0x2a9   : > { %1396 = vrot.lane.b32.xlu0 %v2748_v29, %s2236_s25  ;;  %1348 = vrot.lane.b32.xlu1 %v2748_v29, %s2235_s24 }
 0x2aa   : > { %v1261_v33 = vpop.permute.xlu0 %1260  ;;  %v1225_v34 = vpop.permute.xlu1 %1224 }
 0x2ab   : > { %v1404_v40 = vsel %vm1125_vm9, %v2680_v10, %v1225_v34 }
 0x2ad   : > { %1278 = vrot.lane.b32.xlu0 %v2795_v35, %s2229_s18  ;;  %1230 = vrot.lane.b32.xlu1 %v2795_v35, %s2223_s13 }
 0x2ae   : > { %v1297_v36 = vpop.permute.xlu0 %1296  ;;  %v1237_v37 = vpop.permute.xlu1 %1236 }
 0x2af   : > { %v1408_v48 = vsel %vm803_vm1, %v1404_v40, %v1237_v37 }
 0x2b1   : > { %1302 = vrot.lane.b32.xlu0 %v2795_v35, %s2224_s14  ;;  %1242 = vrot.lane.b32.xlu1 %v2795_v35, %s2225_s7 }
 0x2b2   : > { %v1309_v38 = vpop.permute.xlu0 %1308  ;;  %v1249_v39 = vpop.permute.xlu1 %1248 }
 0x2b3   : > { %v1413_v2 = vsel %vm1412_vm14, %v1408_v48, %v1249_v39 }
 0x2b4   : > { %v1417_v0 = vsel %vm410_vm0, %v1413_v2, %v1261_v33  ;;  %v1181_v33 = vadd.s32 8, %v2557_v50 }
 0x2b5   : > { %1374 = vrot.lane.b32.xlu0 %v2795_v35, %s2232_s21  ;;  %1254 = vrot.lane.b32.xlu1 %v2795_v35, %s2227_s16 }
 0x2b6   : > { %v1333_v3 = vpop.permute.xlu0 %1332  ;;  %v1273_v4 = vpop.permute.xlu1 %1272  ;;  %v1197_v37 = vadd.s32 1, %v1181_v33  ;;  %v1185_v2 = vmul.u32 8, %v1181_v33 }
 0x2b7   : > { %v1422_v7 = vsel %vm1421_vm15, %v1417_v0, %v1273_v4 }
 0x2b9   : > { %1398 = vrot.lane.b32.xlu0 %v2795_v35, %s2236_s25  ;;  %1266 = vrot.lane.b32.xlu1 %v2795_v35, %s2222_s12  ;;  %s372_s12 = scalar_lea.vmem %s3029_s9, %s2329_s26 }
 0x2ba   : > { %v1357_v44 = vpop.permute.xlu0 %1356  ;;  %v1285_v41 = vpop.permute.xlu1 %1284 }
 0x2bb   : > { %v1427_v54 = vsel %vm3035_vm2, %v1422_v7, %v1285_v41 }
 0x2bc   : > { %v1432_v15 = vsel %vm3033_vm3, %v1427_v54, %v1297_v36  ;;  %vm1213_vm3 = vmand %vm2834_vm10, %vm2839_vm11  ;;  %vm3044_vm10 = vcmask 719872   ;;  %vm1191_vm11 = vcmp.ge.s32.totalorder %v2826_v55, %v1185_v2 }
 0x2bd   : > { %1290 = vrot.lane.b32.xlu1 %v2795_v35, %s2231_s20  ;;  %v1437_v42 = vsel %vm3031_vm4, %v1432_v15, %v1309_v38  ;;  %vm1204_vm4 = vcmp.lt.s32.totalorder %v2559_v52, %v1200_v45 }
 0x2be   : > { %v1369_v46 = vpop.permute.xlu0 %1368  ;;  %v1321_v63 = vpop.permute.xlu1 %1320 }
 0x2bf   : > { %v1442_v59 = vsel %vm3030_vm5, %v1437_v42, %v1321_v63  ;;  %vm1188_vm5 = vcmp.ge.s32.totalorder %v2559_v52, %v1184_v49 }
 0x2c0   : > { %v1447_v47 = vsel %vm3032_vm6, %v1442_v59, %v1333_v3  ;;  %vm1471_vm6 = vcmask 982016   ;;  %v1201_v3 = vmul.u32 8, %v1197_v37  ;;  %v1182_v59 = vadd.s32 16, %v2557_v50 }
 0x2c1   : > { %1314 = vrot.lane.b32.xlu1 %v2795_v35, %s2226_s15 }
 0x2c2   : > { %v1381_v58 = vpop.permute.xlu0 %1380  ;;  %v1345_v5 = vpop.permute.xlu1 %1344  ;;  %v1198_v60 = vadd.s32 1, %v1182_v59 }
 0x2c3   : > { %v1452_v62 = vsel %vm3034_vm7, %v1447_v47, %v1345_v5  ;;  %vm1212_vm7 = vmand %vm1188_vm5, %vm1204_vm4  ;;  %vm3041_vm4 = vcmask 523264   ;;  %vm3042_vm5 = vcmask 588800  }
 0x2c4   : > { %v1457_v6 = vsel %vm1456_vm8, %v1452_v62, %v1357_v44 }
 0x2c5   : > { %1326 = vrot.lane.b32.xlu1 %v2795_v35, %s2233_s22  ;;  %v1462_v53 = vsel %vm1461_vm12, %v1457_v6, %v1369_v46 }
 0x2c6   : > { %v1393_v56 = vpop.permute.xlu0 %1392  ;;  %v1467_v1 = vsel %vm1466_vm13, %v1462_v53, %v1381_v58 }
 0x2c7   : > { %v1472_v51 = vsel %vm1471_vm6, %v1467_v1, %v1393_v56 }
 0x2c8   : > { %1907 = vmatprep.mubr.msk.f32.mxu1 %vm1213_vm3, %v1472_v51  ;;  %vm3040_vm3 = vcmask 457728  }
 0x2c9   : > { %1338 = vrot.lane.b32.xlu1 %v2795_v35, %s2228_s17  ;;  %1908 = vmatmul.mubr.msk.f32.vlgmr.msra.gmra.mrb[0].mxu1 %vm1212_vm7, %v1472_v51  ;;  %vm3043_vm7 = vcmask 654336   ;;  %v1186_v51 = vmul.u32 8, %v1182_v59 }
 0x2cd   : > { %1350 = vrot.lane.b32.xlu1 %v2795_v35, %s2235_s24  ;;  %s2987_s24 = scalar_lea.vmem %s3028_s8, %s2329_s26 }
 0x2d1   : > { %1362 = vrot.lane.b32.xlu1 %v2795_v35, %s2230_s19 }
 0x2d5   : > { %1386 = vrot.lane.b32.xlu1 %v2795_v35, %s2234_s23 }
 0x2d8   : > { %1154 = vadd.xlane.f32.xlu0 %v1153_v61  ;;  %v1202_v61 = vmul.u32 8, %v1198_v60 }
 0x2dc   : > { %1157 = vadd.xlane.f32.xlu0 %v1156_v25  ;;  %v1580_v25 = vld [vmem:[%s3024_s4 + $0x18] sm:$0xff] }
 0x2e3   : > { %v1275_v26 = vpop.permute.xlu0 %1274  ;;  %v1227_v8 = vpop.permute.xlu1 %1226 }
 0x2e4   : > { %v1405_v22 = vsel %vm1125_vm9, %v2730_v27, %v1227_v8 }
 0x2e7   : > { %v1299_v9 = vpop.permute.xlu0 %1298  ;;  %v1239_v11 = vpop.permute.xlu1 %1238 }
 0x2e8   : > { %v1409_v23 = vsel %vm803_vm1, %v1405_v22, %v1239_v11  ;;  %v1579_v11 = vld [vmem:[%s3024_s4 + $0x10] sm:$0xff]  ;;  %v1584_v22 = vld [vmem:[%s3024_s4 + $0x38] sm:$0xff] }
 0x2eb   : > { %v1371_v12 = vpop.permute.xlu0 %1370  ;;  %v1251_v13 = vpop.permute.xlu1 %1250 }
 0x2ec   : > { %v1414_v24 = vsel %vm1412_vm14, %v1409_v23, %v1251_v13 }
 0x2ef   : > { %v1395_v14 = vpop.permute.xlu0 %1394  ;;  %v1263_v16 = vpop.permute.xlu1 %1262 }
 0x2f0   : > { %v1418_v31 = vsel %vm410_vm0, %v1414_v24, %v1263_v16 }
 0x2f1   : > { %v1423_v10 = vsel %vm1421_vm15, %v1418_v31, %v1275_v26  ;;  %v1581_v31 = vld [vmem:[%s3024_s4 + $0x20] sm:$0xff] }
 0x2f3   : > { %v1241_v17 = vpop.permute.xlu0 %1240  ;;  %v1287_v18 = vpop.permute.xlu1 %1286 }
 0x2f4   : > { %v1428_v27 = vsel %vm3035_vm2, %v1423_v10, %v1287_v18  ;;  %vm1190_vm2 = vcmp.ge.s32.totalorder %v2559_v52, %v1185_v2 }
 0x2f5   : > { %v1433_v38 = vsel %vm3040_vm3, %v1428_v27, %v1299_v9  ;;  %vm1207_vm3 = vcmp.lt.s32.totalorder %v2826_v55, %v1201_v3  ;;  %v1577_v9 = vld [vmem:[%s3024_s4] sm:$0xff] }
 0x2f7   : > { %v1265_v19 = vpop.permute.xlu0 %1264  ;;  %v1311_v20 = vpop.permute.xlu1 %1310 }
 0x2f8   : > { %v1438_v48 = vsel %vm3041_vm4, %v1433_v38, %v1311_v20  ;;  %vm1206_vm4 = vcmp.lt.s32.totalorder %v2559_v52, %v1201_v3 }
 0x2f9   : > { %1151 = vadd.xlane.f32.xlu1 %v1150_v21  ;;  %v1582_v21 = vld [vmem:[%s3024_s4 + $0x28] sm:$0xff] }
 0x2fb   : > { %v1277_v28 = vpop.permute.xlu0 %1276  ;;  %v1323_v30 = vpop.permute.xlu1 %1322 }
 0x2fc   : > { %v1443_v4 = vsel %vm3042_vm5, %v1438_v48, %v1323_v30  ;;  %vm1215_vm5 = vmand %vm1191_vm11, %vm1207_vm3  ;;  %vm3047_vm11 = vcmask 523264   ;;  %vm3048_vm3 = vcmask 588800   ;;  %v2102_v30 = vpack.c.bf16 %v1584_v22, %v1582_v21 }
 0x2fd   : > { %1160 = vadd.xlane.f32.xlu1 %v1159_v32  ;;  %v1583_v32 = vld [vmem:[%s3024_s4 + $0x30] sm:$0xff] }
 0x2fe   : > { %v2104_v10 = vpack.c.bf16 %v1583_v32, %v1581_v31 }
 0x2ff   : > { %v1289_v34 = vpop.permute.xlu0 %1288  ;;  %v1335_v36 = vpop.permute.xlu1 %1334 }
 0x300   : > { %v1448_v0 = vsel %vm3043_vm7, %v1443_v4, %v1335_v36  ;;  %vm1214_vm7 = vmand %vm1190_vm2, %vm1206_vm4  ;;  %vm3045_vm2 = vcmask 392192   ;;  %vm3049_vm4 = vcmask 654336  }
 0x303   : > { %v1301_v39 = vpop.permute.xlu0 %1300  ;;  %v1347_v40 = vpop.permute.xlu1 %1346 }
 0x304   : > { %v1453_v7 = vsel %vm3044_vm10, %v1448_v0, %v1347_v40  ;;  %vm3046_vm10 = vcmask 457728  }
 0x307   : > { %v1313_v44 = vpop.permute.xlu0 %1312  ;;  %v1359_v41 = vpop.permute.xlu1 %1358 }
 0x308   : > { %v1458_v43 = vsel %vm1456_vm8, %v1453_v7, %v1359_v41 }
 0x309   : > { %v1463_v15 = vsel %vm1461_vm12, %v1458_v43, %v1371_v12 }
 0x30b   : > { %v1337_v54 = vpop.permute.xlu0 %1336  ;;  %v1383_v42 = vpop.permute.xlu1 %1382 }
 0x30c   : > { %v1468_v46 = vsel %vm1466_vm13, %v1463_v15, %v1383_v42 }
 0x30d   : > { %v1473_v63 = vsel %vm1471_vm6, %v1468_v46, %v1395_v14  ;;  %v2100_v14 = vpack.c.bf16 %v1579_v11, %v1577_v9 }
 0x30e   : > { %1909 = vmatprep.mubr.msk.f32.mxu1 %vm1215_vm5, %v1473_v63  ;;  %vm2918_vm5 = vcmp.ge.s32.totalorder %v2826_v55, %v1186_v51 }
 0x30f   : > { %v1361_v49 = vpop.permute.xlu0 %1360  ;;  %1910 = vmatmul.mubr.msk.f32.gmra.mrb[2].mxu1 %vm1214_vm7, %v1473_v63  ;;  %v1229_v45 = vpop.permute.xlu1 %1228  ;;  %vm2923_vm7 = vcmp.lt.s32.totalorder %v2826_v55, %v1202_v61 }
 0x310   : > { %v1406_v58 = vsel %vm1125_vm9, %v2748_v29, %v1229_v45  ;;  %v1578_v29 = vld [vmem:[%s3024_s4 + $0x8] sm:$0xff] }
 0x311   : > { %v1410_v5 = vsel %vm803_vm1, %v1406_v58, %v1241_v17  ;;  %v2098_v8 = vpack.c.bf16 %v1580_v25, %v1578_v29  ;;  %v2237_v25 = vmov 0.0  }
 0x313   : > { %v1373_v47 = vpop.permute.xlu0 %1372  ;;  %v1253_v57 = vpop.permute.xlu1 %1252  ;;  %2099 = vmatprep.subr.bf16.mxu1 %v2098_v8 }
 0x314   : > { %v1415_v62 = vsel %vm1412_vm14, %v1410_v5, %v1253_v57  ;;  %2101 = vmatpush1.bf16.msra.mxu1 %v2100_v14 }
 0x315   : > { %v1419_v6 = vsel %vm410_vm0, %v1415_v62, %v1265_v19  ;;  %2103 = vmatprep.subr.bf16.mxu1 %v2102_v30 }
 0x316   : > { %v1424_v53 = vsel %vm1421_vm15, %v1419_v6, %v1277_v28 }
 0x317   : > { %v1429_v56 = vsel %vm3045_vm2, %v1424_v53, %v1289_v34  ;;  %v1325_v1 = vpop.permute.xlu1 %1324  ;;  %v1385_v12 = vpop.permute.xlu0 %1384  ;;  %vm3054_vm2 = vcmask 719872  }
 0x318   : > { %v1434_v26 = vsel %vm3046_vm10, %v1429_v56, %v1301_v39  ;;  %vm2935_vm10 = vcmp.ge.s32.totalorder %v2559_v52, %v1186_v51  ;;  %2105 = vmatpush1.bf16.msra.mxu1 %v2104_v10 }
 0x319   : > { %v1439_v13 = vsel %vm3047_vm11, %v1434_v26, %v1313_v44  ;;  %vm2940_vm11 = vcmp.lt.s32.totalorder %v2559_v52, %v1202_v61 }
 0x31a   : > { %v1444_v16 = vsel %vm3048_vm3, %v1439_v13, %v1325_v1  ;;  %vm1217_vm3 = vmand %vm2918_vm5, %vm2923_vm7  ;;  %vm3059_vm5 = vcmask 392192   ;;  %vm3060_vm7 = vcmask 457728  }
 0x31b   : > { %v1449_v17 = vsel %vm3049_vm4, %v1444_v16, %v1337_v54  ;;  %v1349_v18 = vpop.permute.xlu1 %1348  ;;  %v1397_v36 = vpop.permute.xlu0 %1396  ;;  %vm1216_vm4 = vmand %vm2935_vm10, %vm2940_vm11  ;;  %v1183_v54 = vadd.s32 24, %v2557_v50 }
 0x31c   : > { %v1454_v23 = vsel %vm3054_vm2, %v1449_v17, %v1349_v18 }
 0x31d   : > { %v1459_v33 = vsel %vm1456_vm8, %v1454_v23, %v1361_v49  ;;  %v1199_v49 = vadd.s32 1, %v1183_v54  ;;  %v1187_v58 = vmul.u32 8, %v1183_v54 }
 0x31e   : > { %v1464_v34 = vsel %vm1461_vm12, %v1459_v33, %v1373_v47 }
 0x31f   : > { %v1231_v27 = vpop.permute.xlu1 %1230  ;;  %v1469_v37 = vsel %vm1466_vm13, %v1464_v34, %v1385_v12  ;;  %v1279_v0 = vpop.permute.xlu0 %1278  ;;  %v1203_v47 = vmul.u32 8, %v1199_v49  ;;  %vm1194_vm11 = vcmp.ge.s32.totalorder %v2559_v52, %v1187_v58 }
 0x320   : > { %v1474_v38 = vsel %vm1471_vm6, %v1469_v37, %v1397_v36  ;;  %v1407_v4 = vsel %vm1125_vm9, %v2795_v35, %v1231_v27  ;;  %vm3061_vm9 = vcmask 523264  }
 0x321   : > { %1911 = vmatprep.mubr.msk.f32.mxu1 %vm1217_vm3, %v1474_v38  ;;  %vm1211_vm10 = vcmp.lt.s32.totalorder %v2826_v55, %v1203_v47  ;;  %vm1210_vm3 = vcmp.lt.s32.totalorder %v2559_v52, %v1203_v47 }
 0x322   : > { %1912 = vmatmul.mubr.msk.f32.gmra.mrb[4].mxu1 %vm1216_vm4, %v1474_v38 }
 0x323   : > { %v1243_v39 = vpop.permute.xlu1 %1242  ;;  %v1303_v46 = vpop.permute.xlu0 %1302 }
 0x324   : > { %v1411_v7 = vsel %vm803_vm1, %v1407_v4, %v1243_v39  ;;  %vm3062_vm1 = vcmask 588800  }
 0x327   : > { %v1255_v40 = vpop.permute.xlu1 %1254  ;;  %v1375_v57 = vpop.permute.xlu0 %1374 }
 0x328   : > { %v1416_v44 = vsel %vm1412_vm14, %v1411_v7, %v1255_v40  ;;  %vm3063_vm14 = vcmask 654336   ;;  %v1589_v7 = vsub.s32 0, %v2557_v50 }
 0x32b   : > { %v1267_v48 = vpop.permute.xlu1 %1266  ;;  %v1399_v51 = vpop.permute.xlu0 %1398 }
 0x32c   : > { %v1420_v43 = vsel %vm410_vm0, %v1416_v44, %v1267_v48  ;;  %v1585_v44 = vld [vmem:[%s3025_s5] sm:$0x3] }
 0x32d   : > { %v1425_v15 = vsel %vm1421_vm15, %v1420_v43, %v1279_v0  ;;  %vm1195_vm15 = vcmp.ge.s32.totalorder %v2826_v55, %v1187_v58  ;;  %v1590_v43 = vrot.slane %v1585_v44, %v1589_v7 }
 0x32e   : > { %vm1219_vm4 = vmand %vm1195_vm15, %vm1211_vm10 }
 0x32f   : > { %v1291_v2 = vpop.permute.xlu1 %1290 }
 0x330   : > { %v1430_v63 = vsel %vm3059_vm5, %v1425_v15, %v1291_v2  ;;  %vm1218_vm5 = vmand %vm1194_vm11, %vm1210_vm3  ;;  %v1706_v15 = vld [vmem:[%s3026_s6] sm:$0x3] }
 0x331   : > { %v1435_v45 = vsel %vm3060_vm7, %v1430_v63, %v1303_v46 }
 0x333   : > { %v1315_v3 = vpop.permute.xlu1 %1314 }
 0x334   : > { %v1440_v59 = vsel %vm3061_vm9, %v1435_v45, %v1315_v3 }
 0x337   : > { %v1327_v41 = vpop.permute.xlu1 %1326 }
 0x338   : > { %v1445_v5 = vsel %vm3062_vm1, %v1440_v59, %v1327_v41  ;;  %v1593_v41 = vsub.s32 1, %v2557_v50  ;;  %v1711_v59 = vrot.slane %v1706_v15, %v1589_v7 }
 0x33a   : > { %v1594_v54 = vrot.slane %v1585_v44, %v1593_v41  ;;  %v1715_v45 = vrot.slane %v1706_v15, %v1593_v41 }
 0x33b   : > { %v1339_v42 = vpop.permute.xlu1 %1338 }
 0x33c   : > { %v1450_v60 = vsel %vm3063_vm14, %v1445_v5, %v1339_v42 }
 0x33f   : > { %v1351_v35 = vpop.permute.xlu1 %1350 }
 0x340   : > { %v1455_v62 = vsel %vm3054_vm2, %v1450_v60, %v1351_v35 }
 0x343   : > { %v1363_v6 = vpop.permute.xlu1 %1362 }
 0x344   : > { %v1460_v53 = vsel %vm1456_vm8, %v1455_v62, %v1363_v6 }
 0x345   : > { %v1465_v56 = vsel %vm1461_vm12, %v1460_v53, %v1375_v57 }
 0x347   : > { %v1387_v1 = vpop.permute.xlu1 %1386 }
 0x348   : > { %v1470_v61 = vsel %vm1466_vm13, %v1465_v56, %v1387_v1 }
 0x349   : > { %v1475_v29 = vsel %vm1471_vm6, %v1470_v61, %v1399_v51  ;;  %vm1754_vm6 = vcmask 7168  }
 0x34a   : > { %1913 = vmatprep.mubr.msk.f32.mxu1 %vm1219_vm4, %v1475_v29 }
 0x34b   : > { %1914 = vmatmul.mubr.msk.f32.gmra.mrb[6].mxu1 %vm1218_vm5, %v1475_v29 }
 0x34c   : > { %1673 = vmatprep.mubr.f32.mxu1 %v2237_v25 }
 0x365   : > { %v1155_v16 = vpop.xlane.xlu0 %1154 }
 0x369   : > { %v1158_v19 = vpop.xlane.xlu0 %1157 }
 0x386   : > { %v1152_v55 = vpop.xlane.xlu1 %1151 }
 0x387   : > { %2205 = vrcp.f32 %v1152_v55 }
 0x388   : > { %2207 = vrcp.f32 %v1155_v16 }
 0x389   : > { %2209 = vrcp.f32 %v1158_v19 }
 0x38a   : > { %v1161_v37 = vpop.xlane.xlu1 %1160 }
 0x38b   : > { %2211 = vrcp.f32 %v1161_v37 }
 0x391   : > { %v2206_v26 = vpop.eup %2205 }
 0x392   : > { %v1166_v8 = vmul.f32 %v2206_v26, %v1152_v55  ;;  %v2208_v17 = vpop.eup %2207 }
 0x393   : > { %v1167_v18 = vmul.f32 %v2208_v17, %v1155_v16  ;;  %v2210_v30 = vpop.eup %2209 }
 0x394   : > { %v1170_v52 = vsub.f32 2.0, %v1166_v8  ;;  %v1168_v31 = vmul.f32 %v2210_v30, %v1158_v19 }
 0x395   : > { %v1171_v20 = vsub.f32 2.0, %v1167_v18  ;;  %v2212_v38 = vpop.eup %2211 }
 0x396   : > { %v1174_v12 = vmul.f32 %v2206_v26, %v1170_v52  ;;  %v1172_v32 = vsub.f32 2.0, %v1168_v31  ;;  %v1169_v39 = vmul.f32 %v2212_v38, %v1161_v37  ;;  %v1919_v31 = vld [vmem:[#allocation2] ss:$0 sm:$0xff] }
 0x397   : > { %v1175_v23 = vmul.f32 %v2208_v17, %v1171_v20 }
 0x398   : > { %v1176_v34 = vmul.f32 %v2210_v30, %v1172_v32  ;;  %v1173_v40 = vsub.f32 2.0, %v1169_v39 }
 0x39a   : > { %v1177_v3 = vmul.f32 %v2212_v38, %v1173_v40 }
 0x39c   : > { %v1990_v9 = vpop.f32.mrb[0].mxu1 }
 0x39d   : > { %v1991_v11 = vpop.f32.mrb[1].mxu1 }
 0x39e   : > { %v1992_v13 = vadd.f32 %v1991_v11, %v1990_v9 }
 0x3a0   : > { %v1569_v14 = vmul.f32 %v1992_v13, %v1174_v12 }
 0x3a2   : > { %1573 = vst.msk [vmem:[%s2987_s24] sm:$0xff] %vm410_vm0, %v1569_v14  ;;  %1915 = vmatmul.mubr.msk.f32.vlgmr.msra.gmra.mrb[8].mxu1 %vm410_vm0, %v1569_v14 }
 0x3a3   : > { %1679 = vmatprep.mubr.f32.mxu1 %v2237_v25 }
 0x3e2   : > { %v1993_v21 = vpop.f32.mrb[2].mxu1 }
 0x3e3   : > { %v1994_v22 = vpop.f32.mrb[3].mxu1 }
 0x3e4   : > { %v1995_v24 = vadd.f32 %v1994_v22, %v1993_v21 }
 0x3e6   : > { %v1570_v28 = vmul.f32 %v1995_v24, %v1175_v23 }
 0x3e8   : > { %1574 = vst.msk [vmem:[%s2987_s24 + $0x8] sm:$0xff] %vm410_vm0, %v1570_v28  ;;  %1916 = vmatmul.mubr.msk.f32.gmra.mrb[10].mxu1 %vm410_vm0, %v1570_v28 }
 0x3e9   : > { %1685 = vmatprep.mubr.f32.mxu1 %v2237_v25 }
 0x3f5   : > { %v1996_v33 = vpop.f32.mrb[4].mxu1 }
 0x3f6   : > { %v1997_v10 = vpop.f32.mrb[5].mxu1 }
 0x3f7   : > { %v1998_v36 = vadd.f32 %v1997_v10, %v1996_v33 }
 0x3f9   : > { %v1571_v27 = vmul.f32 %v1998_v36, %v1176_v34 }
 0x3fb   : > { %1575 = vst.msk [vmem:[%s2987_s24 + $0x10] sm:$0xff] %vm410_vm0, %v1571_v27  ;;  %1917 = vmatmul.mubr.msk.f32.gmra.mrb[12].mxu1 %vm410_vm0, %v1571_v27 }
 0x3fc   : > { %1691 = vmatprep.mubr.f32.mxu1 %v2237_v25 }
 0x41e   : > { %v1999_v48 = vpop.f32.mrb[6].mxu1 }
 0x41f   : > { %v2000_v2 = vpop.f32.mrb[7].mxu1 }
 0x420   : > { %v2001_v4 = vadd.f32 %v2000_v2, %v1999_v48 }
 0x422   : > { %v1572_v0 = vmul.f32 %v2001_v4, %v1177_v3 }
 0x424   : > { %1576 = vst.msk [vmem:[%s2987_s24 + $0x18] sm:$0xff] %vm410_vm0, %v1572_v0  ;;  %1918 = vmatmul.mubr.msk.f32.gmra.mrb[14].mxu1 %vm410_vm0, %v1572_v0  ;;  %vm1726_vm0 = vcmask 179200  }
 0x475   : > { %v1675_v42 = vpop.f32.mrb[8].mxu1 }
 0x476   : > { %v1676_v46 = vadd.f32 %v1675_v42, %v1590_v43  ;;  %v1677_v63 = vpop.f32.mrb[9].mxu1 }
 0x477   : > { %v1678_v49 = vadd.f32 %v1677_v63, %v1594_v54 }
 0x478   : > { %v1698_v35 = vmax.f32 %v1676_v46, 0.0 }
 0x479   : > { %v1699_v58 = vmax.f32 %v1678_v49, 0.0 }
 0x47a   : > { %v1718_v5 = vmul.f32 %v1711_v59, %v1698_v35 }
 0x47b   : > { %v1719_v47 = vmul.f32 %v1715_v45, %v1699_v58 }
 0x47d   : > { %v1727_v57 = vsel %vm1726_vm0, %v1719_v47, 0.0 }
 0x47e   : > { %v1728_v50 = vadd.f32 %v1727_v57, %v1718_v5 }
 0x480   : > { %1729 = vadd.xlane.f32.xlu0 %v1728_v50 }
 0x4bb   : > { %v1681_v60 = vpop.f32.mrb[10].mxu1 }
 0x4bc   : > { %v1682_v62 = vadd.f32 %v1681_v60, %v1590_v43  ;;  %v1683_v6 = vpop.f32.mrb[11].mxu1 }
 0x4bd   : > { %v1684_v53 = vadd.f32 %v1683_v6, %v1594_v54 }
 0x4be   : > { %v1700_v56 = vmax.f32 %v1682_v62, 0.0 }
 0x4bf   : > { %v1701_v1 = vmax.f32 %v1684_v53, 0.0 }
 0x4c0   : > { %v1720_v61 = vmul.f32 %v1711_v59, %v1700_v56 }
 0x4c1   : > { %v1721_v51 = vmul.f32 %v1715_v45, %v1701_v1 }
 0x4c3   : > { %v1731_v29 = vsel %vm1726_vm0, %v1721_v51, 0.0 }
 0x4c4   : > { %v1732_v25 = vadd.f32 %v1731_v29, %v1720_v61 }
 0x4c6   : > { %1733 = vadd.xlane.f32.xlu1 %v1732_v25 }
 0x4ce   : > { %v1687_v55 = vpop.f32.mrb[12].mxu1 }
 0x4cf   : > { %v1688_v26 = vadd.f32 %v1687_v55, %v1590_v43  ;;  %v1689_v8 = vpop.f32.mrb[13].mxu1 }
 0x4d0   : > { %v1690_v52 = vadd.f32 %v1689_v8, %v1594_v54 }
 0x4d1   : > { %v1702_v9 = vmax.f32 %v1688_v26, 0.0 }
 0x4d2   : > { %v1703_v11 = vmax.f32 %v1690_v52, 0.0 }
 0x4d3   : > { %v1722_v13 = vmul.f32 %v1711_v59, %v1702_v9 }
 0x4d4   : > { %v1723_v12 = vmul.f32 %v1715_v45, %v1703_v11 }
 0x4d6   : > { %v1735_v14 = vsel %vm1726_vm0, %v1723_v12, 0.0 }
 0x4d7   : > { %v1736_v16 = vadd.f32 %v1735_v14, %v1722_v13 }
 0x4d9   : > { %1737 = vadd.xlane.f32.xlu0 %v1736_v16 }
 0x4f7   : > { %v1693_v17 = vpop.f32.mrb[14].mxu1 }
 0x4f8   : > { %v1694_v18 = vadd.f32 %v1693_v17, %v1590_v43  ;;  %v1695_v19 = vpop.f32.mrb[15].mxu1 }
 0x4f9   : > { %v1696_v20 = vadd.f32 %v1695_v19, %v1594_v54 }
 0x4fa   : > { %v1704_v21 = vmax.f32 %v1694_v18, 0.0 }
 0x4fb   : > { %v1705_v22 = vmax.f32 %v1696_v20, 0.0 }
 0x4fc   : > { %v1724_v24 = vmul.f32 %v1711_v59, %v1704_v21 }
 0x4fd   : > { %v1725_v23 = vmul.f32 %v1715_v45, %v1705_v22 }
 0x4ff   : > { %v1739_v28 = vsel %vm1726_vm0, %v1725_v23, 0.0 }
 0x500   : > { %v1740_v30 = vadd.f32 %v1739_v28, %v1724_v24 }
 0x502   : > { %1741 = vadd.xlane.f32.xlu1 %v1740_v30 }
 0x50d   : > { %v1730_v32 = vpop.xlane.xlu0 %1729 }
 0x50e   : > { %v1750_v33 = vadd.f32 %v1919_v31, %v1730_v32 }
 0x510   : > { %1755 = vst.msk [vmem:[%s372_s12] sm:$0xff] %vm1754_vm6, %v1750_v33 }
 0x553   : > { %v1734_v10 = vpop.xlane.xlu1 %1733 }
 0x554   : > { %v1751_v34 = vadd.f32 %v1919_v31, %v1734_v10 }
 0x556   : > { %1756 = vst.msk [vmem:[%s372_s12 + $0x8] sm:$0xff] %vm1754_vm6, %v1751_v34 }
 0x566   : > { %v1738_v36 = vpop.xlane.xlu0 %1737 }
 0x567   : > { %v1752_v27 = vadd.f32 %v1919_v31, %v1738_v36 }
 0x569   : > { %1757 = vst.msk [vmem:[%s372_s12 + $0x10] sm:$0xff] %vm1754_vm6, %v1752_v27 }
 0x58f   : > { %v1742_v37 = vpop.xlane.xlu1 %1741 }
 0x590   : > { %v1753_v38 = vadd.f32 %v1919_v31, %v1742_v37 }
 0x592   : > { %1758 = vst.msk [vmem:[%s372_s12 + $0x18] sm:$0xff] %vm1754_vm6, %v1753_v38 }
 0x593 PF: > { %s22_s11 = sadd.s32 1, %s2219_s11  }
 0x594   : > { %p19_p5 = scmp.ge.s32.totalorder %s22_s11, 4  }
 0x596   :  { %21 = sbr.rel (!%p19_p5) target bundleno = 3 (0x3), region = 97 }

</bundles_post_ra>
